<compile_context>
chip_gen: v6e
topology: v6e:2x2x1
jax: 0.10.0
libtpu: 0.0.40
codegen_flags: <defaults>
</compile_context>

<pallas_src>
import functools

import jax
import jax.numpy as jnp
from jax import lax
from jax.experimental import pallas as pl
from jax.experimental.pallas import tpu as pltpu

KH = KW = 7          # conv kernel size
PAD = 3              # reflection pad
C_OUT = 3            # output channels (fixed by the module)
_LANE = 128
_CHUNK_TARGET = 512  # target lanes per in-kernel pixel chunk


def _round_up(a, b):
    return -(-a // b) * b


def _final_block_kernel(x_hbm, w_ref, b_ref, out_ref,
                        strip_buf, slab_ref, sem,
                        *, C_k, TH, S, Wlanes, CH, num_chunks,
                        L_strip, L_slab):
    """One (batch n, row-strip s) grid step.

    x_hbm    : (N, C_k, R*Wlanes) bf16 in HBM (raw ref, manual DMA)
    w_ref    : (KH, 3, KW*C_k)    bf16 resident weights, K index = kw*C_k + c
    b_ref    : (3, 1)             f32  bias
    out_ref  : (3, TH*Wlanes)     f32  (garbage cols/rows cropped in wrapper)
    strip_buf: (2, C_k, L_strip)  bf16 double-buffered strip scratch
    slab_ref : (KW*C_k, L_slab)   bf16 kw-shifted slab scratch
    sem      : DMA semaphores (2,)
    """
    n = pl.program_id(0)
    s = pl.program_id(1)

    def _issue(s_idx, slot):
        pltpu.make_async_copy(
            x_hbm.at[n, :, pl.ds(s_idx * (TH * Wlanes), L_strip)],
            strip_buf.at[slot],
            sem.at[slot],
        ).start()

    # Prime on the first strip of this image. The strip axis is "arbitrary"
    # (sequential per core), so priming at s == 0 is safe even when the batch
    # axis is split across TensorCores.
    @pl.when(s == 0)
    def _():
        _issue(0, 0)

    slot = s % 2

    # Prefetch the next strip of the same image while we work on this one.
    @pl.when(s + 1 < S)
    def _():
        _issue(s + 1, 1 - slot)

    pltpu.make_async_copy(
        x_hbm.at[n, :, pl.ds(s * (TH * Wlanes), L_strip)],
        strip_buf.at[slot],
        sem.at[slot],
    ).wait()

    # Build the kw-shift slab once per strip: rows [kw*C_k, (kw+1)*C_k) hold
    # the flattened strip shifted left by kw lanes. After this, every tap in
    # the matmul loop is a lane-aligned slice (kh*Wlanes is a 128-multiple),
    # replacing the old 49 misaligned slices + per-kh concatenates.
    for kw in range(KW):
        slab_ref[kw * C_k:(kw + 1) * C_k, :] = strip_buf[slot, :, kw:kw + L_slab]

    bias = b_ref[...]
    w_taps = [w_ref[kh] for kh in range(KH)]   # (3, KW*C_k) each, loaded once

    # Chunked pixel loop: small f32 accumulator in vregs, 7 aligned-K matmuls.
    @pl.loop(0, num_chunks)
    def _(ci):
        off = pl.multiple_of(ci * CH, _LANE)
        acc = jnp.zeros((C_OUT, CH), jnp.float32)
        for kh in range(KH):           # unrolled accumulate chain
            acc = acc + jnp.dot(
                w_taps[kh],
                slab_ref[:, pl.ds(kh * Wlanes + off, CH)],
                preferred_element_type=jnp.float32)
        out_ref[:, pl.ds(off, CH)] = jnp.tanh(acc + bias).astype(out_ref.dtype)


def gnet_final_block(x, weight, bias, *, th_target=64):
    """x: (N, C, H, W) f32, weight: (3, C, 7, 7), bias: (3,) -> (N, 3, H, W)."""
    N, C, H, W = x.shape
    assert weight.shape == (C_OUT, C, KH, KW)

    C_k = C + (C % 2)                       # even rows: bf16 packed-pair aligned
    Wlanes = _round_up(W + 2 * PAD, _LANE)  # rows padded to a lane multiple

    # ---- strip height: as large as a portable VMEM budget allows ----------
    def _vmem_need(th):
        l_strip = (th + KH) * Wlanes
        l_slab = (th + KH - 1) * Wlanes
        p = th * Wlanes
        strip = 2 * _round_up(C_k, 16) * l_strip * 2      # double-buffered
        slab = _round_up(KW * C_k, 16) * l_slab * 2
        outb = 2 * 8 * p * 4                              # pipelined out blocks
        return strip + slab + outb + (2 << 20)

    budget = 28 * 2 ** 20        # fits v7x's 32 MiB scoped default w/ headroom
    TH = min(H, th_target)
    while TH > 8 and _vmem_need(TH) > budget:
        TH = max(8, TH // 2)
    S = -(-H // TH)
    H_pad = S * TH
    R = H_pad + KH               # padded rows incl. one guard row
    L_strip = (TH + KH) * Wlanes
    L_slab = (TH + KH - 1) * Wlanes
    P = TH * Wlanes

    rpc = max(1, _CHUNK_TARGET // Wlanes)   # output rows per pixel chunk
    while TH % rpc:
        rpc -= 1
    CH = rpc * Wlanes
    num_chunks = TH // rpc

    # ---- wrapper glue: reflect pad + guard rows/cols + bf16 cast ----------
    x_p = jnp.pad(x, ((0, 0), (0, 0), (PAD, PAD), (PAD, PAD)), mode="reflect")
    x_p = jnp.pad(
        x_p,
        ((0, 0), (0, C_k - C),
         (0, R - (H + 2 * PAD)), (0, Wlanes - (W + 2 * PAD))))
    x_flat = x_p.reshape(N, C_k, R * Wlanes).astype(jnp.bfloat16)
    # TODO(synk): fold reflection pad / row padding into the kernel via a
    # scalar-prefetched row table to remove this extra XLA pad+cast pass.

    # ---- weights: (3, C, 7, 7) -> (KH, 3, KW*C_k) matching slab row order --
    w_t = jnp.transpose(weight, (2, 0, 3, 1))            # (KH, CO, KW, C)
    w_t = jnp.pad(w_t, ((0, 0), (0, 0), (0, 0), (0, C_k - C)))
    w_r = w_t.reshape(KH, C_OUT, KW * C_k).astype(jnp.bfloat16)
    b_r = bias.reshape(C_OUT, 1).astype(jnp.float32)

    kernel = functools.partial(
        _final_block_kernel, C_k=C_k, TH=TH, S=S, Wlanes=Wlanes, CH=CH,
        num_chunks=num_chunks, L_strip=L_strip, L_slab=L_slab)

    vmem_limit = int(min(48 * 2 ** 20, _vmem_need(TH) + 16 * 2 ** 20))

    out_flat = pl.pallas_call(
        kernel,
        out_shape=jax.ShapeDtypeStruct((N, C_OUT, H_pad * Wlanes), x.dtype),
        grid_spec=pltpu.PrefetchScalarGridSpec(
            num_scalar_prefetch=0,
            grid=(N, S),
            in_specs=[
                pl.BlockSpec(memory_space=pl.ANY),        # raw HBM, manual DMA
                pl.BlockSpec((KH, C_OUT, KW * C_k), lambda n, s: (0, 0, 0)),
                pl.BlockSpec((C_OUT, 1), lambda n, s: (0, 0)),
            ],
            out_specs=pl.BlockSpec((None, C_OUT, P), lambda n, s: (n, 0, s)),
            scratch_shapes=[
                pltpu.VMEM((2, C_k, L_strip), jnp.bfloat16),
                pltpu.VMEM((KW * C_k, L_slab), jnp.bfloat16),
                pltpu.SemaphoreType.DMA((2,)),
            ]),
        compiler_params=pltpu.CompilerParams(
            dimension_semantics=("parallel", "arbitrary"),
            vmem_limit_bytes=vmem_limit),
    )(x_flat, w_r, b_r)

    # free reshape + crop of the garbage columns / guard rows (NCHW out).
    return out_flat.reshape(N, C_OUT, H_pad, Wlanes)[:, :, :H, :W]


def _reference(x, weight, bias):
    """Pure-JAX f32 reference: reflect pad + VALID conv + tanh (NCHW)."""
    x_pad = jnp.pad(x, ((0, 0), (0, 0), (PAD, PAD), (PAD, PAD)), mode="reflect")
    y = lax.conv_general_dilated(
        x_pad, weight, window_strides=(1, 1), padding="VALID",
        dimension_numbers=("NCHW", "OIHW", "NCHW"))
    return jnp.tanh(y + bias[None, :, None, None])


if __name__ == "__main__":
    key = jax.random.PRNGKey(0)
    kx, kwt, kb = jax.random.split(key, 3)

    N, C_IN, H, W = 2, 4, 16, 16
    x = jax.random.normal(kx, (N, C_IN, H, W), dtype=jnp.float32)
    weight = 0.1 * jax.random.normal(kwt, (C_OUT, C_IN, KH, KW), dtype=jnp.float32)
    bias = 0.1 * jax.random.normal(kb, (C_OUT,), dtype=jnp.float32)

    out = jax.block_until_ready(gnet_final_block(x, weight, bias))
    ref = jax.block_until_ready(_reference(x, weight, bias))

    assert out.shape == (N, C_OUT, H, W), out.shape
    # bf16 matmul inputs (f32 accumulation) -> loosened tolerance (tanh-bounded).
    err = float(jnp.max(jnp.abs(out - ref)))
    assert jnp.allclose(out, ref, atol=3e-2, rtol=3e-2), err

    print("KERNEL_OK")
</pallas_src>

<mosaic_0001>
module attributes {stable_mosaic.version = 11 : i64} {
  func.func @_final_block_kernel(%arg0: i32, %arg1: i32, %arg2: memref<2x4x2944xbf16, #tpu.memory_space<any>>, %arg3: memref<7x3x28xbf16, #tpu.memory_space<vmem>>, %arg4: memref<3x1xf32, #tpu.memory_space<vmem>>, %arg5: memref<1x3x2048xf32, #tpu.memory_space<vmem>>, %arg6: memref<2x4x2944xbf16, #tpu.memory_space<vmem>>, %arg7: memref<28x2816xbf16, #tpu.memory_space<vmem>>, %arg8: memref<2x!tpu.dma_semaphore, #tpu.memory_space<semaphore_mem>>) attributes {dimension_semantics = [#tpu.dimension_semantics<parallel>, #tpu.dimension_semantics<arbitrary>], iteration_bounds = array<i64: 2, 1>, scalar_prefetch = 0 : i64, scratch_operands = 3 : i64, tpu.core_type = #tpu.core_type<tc>, window_params = [{}, {pipeline_mode = #tpu.pipeline_mode<synchronous>, transform_indices = @transform_1, window_bounds = array<i64: 7, 3, 28>}, {pipeline_mode = #tpu.pipeline_mode<synchronous>, transform_indices = @transform_2, window_bounds = array<i64: 3, 1>}, {transform_indices = @transform_3, window_bounds = array<i64: 1, 3, 2048>}]} {
    %c0_i32 = arith.constant 0 : i32
    %0 = arith.cmpi eq, %arg1, %c0_i32 : i32
    %1 = arith.extui %0 : i1 to i32
    %c0_i32_0 = arith.constant 0 : i32
    %2 = arith.cmpi ne, %1, %c0_i32_0 : i32
    scf.if %2 {
      %c0_i32_53 = arith.constant 0 : i32
      %c0_i32_54 = arith.constant 0 : i32
      %c0_i32_55 = arith.constant 0 : i32
      %c0_i32_56 = arith.constant 0 : i32
      %68 = tpu.memref_slice %arg2[%arg0, %c0_i32_55, %c0_i32_56] : memref<2x4x2944xbf16, #tpu.memory_space<any>> -> memref<1x4x2944xbf16, #tpu.memory_space<any>>
      %69 = tpu.memref_squeeze %68 : memref<1x4x2944xbf16, #tpu.memory_space<any>> -> memref<4x2944xbf16, #tpu.memory_space<any>>
      %c0_i32_57 = arith.constant 0 : i32
      %c0_i32_58 = arith.constant 0 : i32
      %70 = tpu.memref_slice %arg6[%c0_i32_53, %c0_i32_57, %c0_i32_58] : memref<2x4x2944xbf16, #tpu.memory_space<vmem>> -> memref<1x4x2944xbf16, #tpu.memory_space<vmem>>
      %71 = tpu.memref_squeeze %70 : memref<1x4x2944xbf16, #tpu.memory_space<vmem>> -> memref<4x2944xbf16, #tpu.memory_space<vmem>>
      %72 = tpu.memref_slice %arg8[%c0_i32_54] : memref<2x!tpu.dma_semaphore, #tpu.memory_space<semaphore_mem>> -> memref<1x!tpu.dma_semaphore, #tpu.memory_space<semaphore_mem>>
      %73 = tpu.memref_squeeze %72 : memref<1x!tpu.dma_semaphore, #tpu.memory_space<semaphore_mem>> -> memref<!tpu.dma_semaphore, #tpu.memory_space<semaphore_mem>>
      tpu.enqueue_dma source(%69 : memref<4x2944xbf16, #tpu.memory_space<any>>) target(%71 : memref<4x2944xbf16, #tpu.memory_space<vmem>>) target_semaphore(%73 : memref<!tpu.dma_semaphore, #tpu.memory_space<semaphore_mem>>)
    } else {
    }
    %c2_i32 = arith.constant 2 : i32
    %c0_i32_1 = arith.constant 0 : i32
    %3 = arith.cmpi eq, %c2_i32, %c0_i32_1 : i32
    %c1_i32 = arith.constant 1 : i32
    %4 = arith.select %3, %c1_i32, %c2_i32 : i32
    %5 = arith.remsi %arg1, %4 : i32
    %c0_i32_2 = arith.constant 0 : i32
    %6 = arith.cmpi ne, %5, %c0_i32_2 : i32
    %c0_i32_3 = arith.constant 0 : i32
    %7 = arith.cmpi slt, %5, %c0_i32_3 : i32
    %c0_i32_4 = arith.constant 0 : i32
    %8 = arith.cmpi slt, %4, %c0_i32_4 : i32
    %9 = arith.xori %7, %8 : i1
    %10 = arith.andi %9, %6 : i1
    %11 = arith.addi %5, %4 : i32
    %12 = arith.select %10, %11, %5 : i32
    %c1_i32_5 = arith.constant 1 : i32
    %13 = arith.addi %arg1, %c1_i32_5 : i32
    %c1_i32_6 = arith.constant 1 : i32
    %14 = arith.cmpi slt, %13, %c1_i32_6 : i32
    %15 = arith.extui %14 : i1 to i32
    %c0_i32_7 = arith.constant 0 : i32
    %16 = arith.cmpi ne, %15, %c0_i32_7 : i32
    scf.if %16 {
      %c1_i32_53 = arith.constant 1 : i32
      %68 = arith.addi %arg1, %c1_i32_53 : i32
      %c1_i32_54 = arith.constant 1 : i32
      %69 = arith.subi %c1_i32_54, %12 : i32
      %c2048_i32_55 = arith.constant 2048 : i32
      %70 = arith.muli %68, %c2048_i32_55 : i32
      %c0_i32_56 = arith.constant 0 : i32
      %71 = tpu.memref_slice %arg2[%arg0, %c0_i32_56, %70] : memref<2x4x2944xbf16, #tpu.memory_space<any>> -> memref<1x4x2944xbf16, #tpu.memory_space<any>>
      %72 = tpu.memref_squeeze %71 : memref<1x4x2944xbf16, #tpu.memory_space<any>> -> memref<4x2944xbf16, #tpu.memory_space<any>>
      %c0_i32_57 = arith.constant 0 : i32
      %c0_i32_58 = arith.constant 0 : i32
      %73 = tpu.memref_slice %arg6[%69, %c0_i32_57, %c0_i32_58] : memref<2x4x2944xbf16, #tpu.memory_space<vmem>> -> memref<1x4x2944xbf16, #tpu.memory_space<vmem>>
      %74 = tpu.memref_squeeze %73 : memref<1x4x2944xbf16, #tpu.memory_space<vmem>> -> memref<4x2944xbf16, #tpu.memory_space<vmem>>
      %75 = tpu.memref_slice %arg8[%69] : memref<2x!tpu.dma_semaphore, #tpu.memory_space<semaphore_mem>> -> memref<1x!tpu.dma_semaphore, #tpu.memory_space<semaphore_mem>>
      %76 = tpu.memref_squeeze %75 : memref<1x!tpu.dma_semaphore, #tpu.memory_space<semaphore_mem>> -> memref<!tpu.dma_semaphore, #tpu.memory_space<semaphore_mem>>
      tpu.enqueue_dma source(%72 : memref<4x2944xbf16, #tpu.memory_space<any>>) target(%74 : memref<4x2944xbf16, #tpu.memory_space<vmem>>) target_semaphore(%76 : memref<!tpu.dma_semaphore, #tpu.memory_space<semaphore_mem>>)
    } else {
    }
    %c2048_i32 = arith.constant 2048 : i32
    %17 = arith.muli %arg1, %c2048_i32 : i32
    %c0_i32_8 = arith.constant 0 : i32
    %18 = tpu.memref_slice %arg2[%arg0, %c0_i32_8, %17] : memref<2x4x2944xbf16, #tpu.memory_space<any>> -> memref<1x4x2944xbf16, #tpu.memory_space<any>>
    %19 = tpu.memref_squeeze %18 : memref<1x4x2944xbf16, #tpu.memory_space<any>> -> memref<4x2944xbf16, #tpu.memory_space<any>>
    %c0_i32_9 = arith.constant 0 : i32
    %c0_i32_10 = arith.constant 0 : i32
    %20 = tpu.memref_slice %arg6[%12, %c0_i32_9, %c0_i32_10] : memref<2x4x2944xbf16, #tpu.memory_space<vmem>> -> memref<1x4x2944xbf16, #tpu.memory_space<vmem>>
    %21 = tpu.memref_squeeze %20 : memref<1x4x2944xbf16, #tpu.memory_space<vmem>> -> memref<4x2944xbf16, #tpu.memory_space<vmem>>
    %22 = tpu.memref_slice %arg8[%12] : memref<2x!tpu.dma_semaphore, #tpu.memory_space<semaphore_mem>> -> memref<1x!tpu.dma_semaphore, #tpu.memory_space<semaphore_mem>>
    %23 = tpu.memref_squeeze %22 : memref<1x!tpu.dma_semaphore, #tpu.memory_space<semaphore_mem>> -> memref<!tpu.dma_semaphore, #tpu.memory_space<semaphore_mem>>
    tpu.wait_dma2 semaphore(%23 : memref<!tpu.dma_semaphore, #tpu.memory_space<semaphore_mem>>) src(%19 : memref<4x2944xbf16, #tpu.memory_space<any>>) dst(%21 : memref<4x2944xbf16, #tpu.memory_space<vmem>>)
    %24 = arith.index_cast %12 : i32 to index
    %c0 = arith.constant 0 : index
    %c0_11 = arith.constant 0 : index
    %25 = vector.load %arg6[%24, %c0, %c0_11] : memref<2x4x2944xbf16, #tpu.memory_space<vmem>>, vector<1x4x2816xbf16>
    %26 = vector.shape_cast %25 : vector<1x4x2816xbf16> to vector<4x2816xbf16>
    %c0_12 = arith.constant 0 : index
    %c0_13 = arith.constant 0 : index
    %27 = vector.load %arg7[%c0_12, %c0_13] : memref<28x2816xbf16, #tpu.memory_space<vmem>>, vector<4x2816xbf16>
    tpu.vector_store %arg7[%c0_12, %c0_13], %26 {strides = array<i32>} : memref<28x2816xbf16, #tpu.memory_space<vmem>>, vector<4x2816xbf16>,
    %28 = arith.index_cast %12 : i32 to index
    %c0_14 = arith.constant 0 : index
    %c1 = arith.constant 1 : index
    %29 = vector.load %arg6[%28, %c0_14, %c1] : memref<2x4x2944xbf16, #tpu.memory_space<vmem>>, vector<1x4x2816xbf16>
    %30 = vector.shape_cast %29 : vector<1x4x2816xbf16> to vector<4x2816xbf16>
    %c4 = arith.constant 4 : index
    %c0_15 = arith.constant 0 : index
    %31 = vector.load %arg7[%c4, %c0_15] : memref<28x2816xbf16, #tpu.memory_space<vmem>>, vector<4x2816xbf16>
    tpu.vector_store %arg7[%c4, %c0_15], %30 {strides = array<i32>} : memref<28x2816xbf16, #tpu.memory_space<vmem>>, vector<4x2816xbf16>,
    %32 = arith.index_cast %12 : i32 to index
    %c0_16 = arith.constant 0 : index
    %c2 = arith.constant 2 : index
    %33 = vector.load %arg6[%32, %c0_16, %c2] : memref<2x4x2944xbf16, #tpu.memory_space<vmem>>, vector<1x4x2816xbf16>
    %34 = vector.shape_cast %33 : vector<1x4x2816xbf16> to vector<4x2816xbf16>
    %c8 = arith.constant 8 : index
    %c0_17 = arith.constant 0 : index
    %35 = vector.load %arg7[%c8, %c0_17] : memref<28x2816xbf16, #tpu.memory_space<vmem>>, vector<4x2816xbf16>
    tpu.vector_store %arg7[%c8, %c0_17], %34 {strides = array<i32>} : memref<28x2816xbf16, #tpu.memory_space<vmem>>, vector<4x2816xbf16>,
    %36 = arith.index_cast %12 : i32 to index
    %c0_18 = arith.constant 0 : index
    %c3 = arith.constant 3 : index
    %37 = vector.load %arg6[%36, %c0_18, %c3] : memref<2x4x2944xbf16, #tpu.memory_space<vmem>>, vector<1x4x2816xbf16>
    %38 = vector.shape_cast %37 : vector<1x4x2816xbf16> to vector<4x2816xbf16>
    %c12 = arith.constant 12 : index
    %c0_19 = arith.constant 0 : index
    %39 = vector.load %arg7[%c12, %c0_19] : memref<28x2816xbf16, #tpu.memory_space<vmem>>, vector<4x2816xbf16>
    tpu.vector_store %arg7[%c12, %c0_19], %38 {strides = array<i32>} : memref<28x2816xbf16, #tpu.memory_space<vmem>>, vector<4x2816xbf16>,
    %40 = arith.index_cast %12 : i32 to index
    %c0_20 = arith.constant 0 : index
    %c4_21 = arith.constant 4 : index
    %41 = vector.load %arg6[%40, %c0_20, %c4_21] : memref<2x4x2944xbf16, #tpu.memory_space<vmem>>, vector<1x4x2816xbf16>
    %42 = vector.shape_cast %41 : vector<1x4x2816xbf16> to vector<4x2816xbf16>
    %c16 = arith.constant 16 : index
    %c0_22 = arith.constant 0 : index
    %43 = vector.load %arg7[%c16, %c0_22] : memref<28x2816xbf16, #tpu.memory_space<vmem>>, vector<4x2816xbf16>
    tpu.vector_store %arg7[%c16, %c0_22], %42 {strides = array<i32>} : memref<28x2816xbf16, #tpu.memory_space<vmem>>, vector<4x2816xbf16>,
    %44 = arith.index_cast %12 : i32 to index
    %c0_23 = arith.constant 0 : index
    %c5 = arith.constant 5 : index
    %45 = vector.load %arg6[%44, %c0_23, %c5] : memref<2x4x2944xbf16, #tpu.memory_space<vmem>>, vector<1x4x2816xbf16>
    %46 = vector.shape_cast %45 : vector<1x4x2816xbf16> to vector<4x2816xbf16>
    %c20 = arith.constant 20 : index
    %c0_24 = arith.constant 0 : index
    %47 = vector.load %arg7[%c20, %c0_24] : memref<28x2816xbf16, #tpu.memory_space<vmem>>, vector<4x2816xbf16>
    tpu.vector_store %arg7[%c20, %c0_24], %46 {strides = array<i32>} : memref<28x2816xbf16, #tpu.memory_space<vmem>>, vector<4x2816xbf16>,
    %48 = arith.index_cast %12 : i32 to index
    %c0_25 = arith.constant 0 : index
    %c6 = arith.constant 6 : index
    %49 = vector.load %arg6[%48, %c0_25, %c6] : memref<2x4x2944xbf16, #tpu.memory_space<vmem>>, vector<1x4x2816xbf16>
    %50 = vector.shape_cast %49 : vector<1x4x2816xbf16> to vector<4x2816xbf16>
    %c24 = arith.constant 24 : index
    %c0_26 = arith.constant 0 : index
    %51 = vector.load %arg7[%c24, %c0_26] : memref<28x2816xbf16, #tpu.memory_space<vmem>>, vector<4x2816xbf16>
    tpu.vector_store %arg7[%c24, %c0_26], %50 {strides = array<i32>} : memref<28x2816xbf16, #tpu.memory_space<vmem>>, vector<4x2816xbf16>,
    %c0_27 = arith.constant 0 : index
    %c0_28 = arith.constant 0 : index
    %52 = vector.load %arg4[%c0_27, %c0_28] : memref<3x1xf32, #tpu.memory_space<vmem>>, vector<3x1xf32>
    %c0_29 = arith.constant 0 : index
    %c0_30 = arith.constant 0 : index
    %c0_31 = arith.constant 0 : index
    %53 = vector.load %arg3[%c0_29, %c0_30, %c0_31] : memref<7x3x28xbf16, #tpu.memory_space<vmem>>, vector<1x3x28xbf16>
    %54 = vector.shape_cast %53 : vector<1x3x28xbf16> to vector<3x28xbf16>
    %c1_32 = arith.constant 1 : index
    %c0_33 = arith.constant 0 : index
    %c0_34 = arith.constant 0 : index
    %55 = vector.load %arg3[%c1_32, %c0_33, %c0_34] : memref<7x3x28xbf16, #tpu.memory_space<vmem>>, vector<1x3x28xbf16>
    %56 = vector.shape_cast %55 : vector<1x3x28xbf16> to vector<3x28xbf16>
    %c2_35 = arith.constant 2 : index
    %c0_36 = arith.constant 0 : index
    %c0_37 = arith.constant 0 : index
    %57 = vector.load %arg3[%c2_35, %c0_36, %c0_37] : memref<7x3x28xbf16, #tpu.memory_space<vmem>>, vector<1x3x28xbf16>
    %58 = vector.shape_cast %57 : vector<1x3x28xbf16> to vector<3x28xbf16>
    %c3_38 = arith.constant 3 : index
    %c0_39 = arith.constant 0 : index
    %c0_40 = arith.constant 0 : index
    %59 = vector.load %arg3[%c3_38, %c0_39, %c0_40] : memref<7x3x28xbf16, #tpu.memory_space<vmem>>, vector<1x3x28xbf16>
    %60 = vector.shape_cast %59 : vector<1x3x28xbf16> to vector<3x28xbf16>
    %c4_41 = arith.constant 4 : index
    %c0_42 = arith.constant 0 : index
    %c0_43 = arith.constant 0 : index
    %61 = vector.load %arg3[%c4_41, %c0_42, %c0_43] : memref<7x3x28xbf16, #tpu.memory_space<vmem>>, vector<1x3x28xbf16>
    %62 = vector.shape_cast %61 : vector<1x3x28xbf16> to vector<3x28xbf16>
    %c5_44 = arith.constant 5 : index
    %c0_45 = arith.constant 0 : index
    %c0_46 = arith.constant 0 : index
    %63 = vector.load %arg3[%c5_44, %c0_45, %c0_46] : memref<7x3x28xbf16, #tpu.memory_space<vmem>>, vector<1x3x28xbf16>
    %64 = vector.shape_cast %63 : vector<1x3x28xbf16> to vector<3x28xbf16>
    %c6_47 = arith.constant 6 : index
    %c0_48 = arith.constant 0 : index
    %c0_49 = arith.constant 0 : index
    %65 = vector.load %arg3[%c6_47, %c0_48, %c0_49] : memref<7x3x28xbf16, #tpu.memory_space<vmem>>, vector<1x3x28xbf16>
    %66 = vector.shape_cast %65 : vector<1x3x28xbf16> to vector<3x28xbf16>
    %c0_i32_50 = arith.constant 0 : i32
    %c4_i32 = arith.constant 4 : i32
    %67 = arith.addi %c0_i32_50, %c4_i32 : i32
    %c1_i32_51 = arith.constant 1 : i32
    scf.for %arg9 = %c0_i32_50 to %67 step %c1_i32_51  : i32 {
      %c1_i32_53 = arith.constant 1 : i32
      %68 = arith.muli %arg9, %c1_i32_53 : i32
      %c0_i32_54 = arith.constant 0 : i32
      %69 = arith.addi %c0_i32_54, %68 : i32
      %c512_i32 = arith.constant 512 : i32
      %70 = arith.muli %69, %c512_i32 : i32
      %71 = tpu.assume_multiple %70, 128 : i32
      %cst = arith.constant 0.000000e+00 : f32
      %72 = vector.broadcast %cst : f32 to vector<3x512xf32>
      %c0_i32_55 = arith.constant 0 : i32
      %73 = arith.addi %c0_i32_55, %71 : i32
      %c0_56 = arith.constant 0 : index
      %74 = arith.index_cast %73 : i32 to index
      %75 = vector.load %arg7[%c0_56, %74] : memref<28x2816xbf16, #tpu.memory_space<vmem>>, vector<28x512xbf16>
      %cst_57 = arith.constant dense<0.000000e+00> : vector<3x512xf32>
      %76 = tpu.matmul %54, %75, %cst_57 {dimension_numbers = #tpu.dot_dimension_numbers<[1], [0], [0], [1], [0, 0, 1, 1], [], []>} : vector<3x28xbf16>, vector<28x512xbf16>, vector<3x512xf32> -> vector<3x512xf32>
      %77 = arith.addf %72, %76 : vector<3x512xf32>
      %c128_i32 = arith.constant 128 : i32
      %78 = arith.addi %c128_i32, %71 : i32
      %c0_58 = arith.constant 0 : index
      %79 = arith.index_cast %78 : i32 to index
      %80 = vector.load %arg7[%c0_58, %79] : memref<28x2816xbf16, #tpu.memory_space<vmem>>, vector<28x512xbf16>
      %cst_59 = arith.constant dense<0.000000e+00> : vector<3x512xf32>
      %81 = tpu.matmul %56, %80, %cst_59 {dimension_numbers = #tpu.dot_dimension_numbers<[1], [0], [0], [1], [0, 0, 1, 1], [], []>} : vector<3x28xbf16>, vector<28x512xbf16>, vector<3x512xf32> -> vector<3x512xf32>
      %82 = arith.addf %77, %81 : vector<3x512xf32>
      %c256_i32 = arith.constant 256 : i32
      %83 = arith.addi %c256_i32, %71 : i32
      %c0_60 = arith.constant 0 : index
      %84 = arith.index_cast %83 : i32 to index
      %85 = vector.load %arg7[%c0_60, %84] : memref<28x2816xbf16, #tpu.memory_space<vmem>>, vector<28x512xbf16>
      %cst_61 = arith.constant dense<0.000000e+00> : vector<3x512xf32>
      %86 = tpu.matmul %58, %85, %cst_61 {dimension_numbers = #tpu.dot_dimension_numbers<[1], [0], [0], [1], [0, 0, 1, 1], [], []>} : vector<3x28xbf16>, vector<28x512xbf16>, vector<3x512xf32> -> vector<3x512xf32>
      %87 = arith.addf %82, %86 : vector<3x512xf32>
      %c384_i32 = arith.constant 384 : i32
      %88 = arith.addi %c384_i32, %71 : i32
      %c0_62 = arith.constant 0 : index
      %89 = arith.index_cast %88 : i32 to index
      %90 = vector.load %arg7[%c0_62, %89] : memref<28x2816xbf16, #tpu.memory_space<vmem>>, vector<28x512xbf16>
      %cst_63 = arith.constant dense<0.000000e+00> : vector<3x512xf32>
      %91 = tpu.matmul %60, %90, %cst_63 {dimension_numbers = #tpu.dot_dimension_numbers<[1], [0], [0], [1], [0, 0, 1, 1], [], []>} : vector<3x28xbf16>, vector<28x512xbf16>, vector<3x512xf32> -> vector<3x512xf32>
      %92 = arith.addf %87, %91 : vector<3x512xf32>
      %c512_i32_64 = arith.constant 512 : i32
      %93 = arith.addi %c512_i32_64, %71 : i32
      %c0_65 = arith.constant 0 : index
      %94 = arith.index_cast %93 : i32 to index
      %95 = vector.load %arg7[%c0_65, %94] : memref<28x2816xbf16, #tpu.memory_space<vmem>>, vector<28x512xbf16>
      %cst_66 = arith.constant dense<0.000000e+00> : vector<3x512xf32>
      %96 = tpu.matmul %62, %95, %cst_66 {dimension_numbers = #tpu.dot_dimension_numbers<[1], [0], [0], [1], [0, 0, 1, 1], [], []>} : vector<3x28xbf16>, vector<28x512xbf16>, vector<3x512xf32> -> vector<3x512xf32>
      %97 = arith.addf %92, %96 : vector<3x512xf32>
      %c640_i32 = arith.constant 640 : i32
      %98 = arith.addi %c640_i32, %71 : i32
      %c0_67 = arith.constant 0 : index
      %99 = arith.index_cast %98 : i32 to index
      %100 = vector.load %arg7[%c0_67, %99] : memref<28x2816xbf16, #tpu.memory_space<vmem>>, vector<28x512xbf16>
      %cst_68 = arith.constant dense<0.000000e+00> : vector<3x512xf32>
      %101 = tpu.matmul %64, %100, %cst_68 {dimension_numbers = #tpu.dot_dimension_numbers<[1], [0], [0], [1], [0, 0, 1, 1], [], []>} : vector<3x28xbf16>, vector<28x512xbf16>, vector<3x512xf32> -> vector<3x512xf32>
      %102 = arith.addf %97, %101 : vector<3x512xf32>
      %c768_i32 = arith.constant 768 : i32
      %103 = arith.addi %c768_i32, %71 : i32
      %c0_69 = arith.constant 0 : index
      %104 = arith.index_cast %103 : i32 to index
      %105 = vector.load %arg7[%c0_69, %104] : memref<28x2816xbf16, #tpu.memory_space<vmem>>, vector<28x512xbf16>
      %cst_70 = arith.constant dense<0.000000e+00> : vector<3x512xf32>
      %106 = tpu.matmul %66, %105, %cst_70 {dimension_numbers = #tpu.dot_dimension_numbers<[1], [0], [0], [1], [0, 0, 1, 1], [], []>} : vector<3x28xbf16>, vector<28x512xbf16>, vector<3x512xf32> -> vector<3x512xf32>
      %107 = arith.addf %102, %106 : vector<3x512xf32>
      %108 = vector.broadcast %52 : vector<3x1xf32> to vector<3x512xf32>
      %109 = arith.addf %107, %108 : vector<3x512xf32>
      %110 = math.tanh %109 : vector<3x512xf32>
      %c0_71 = arith.constant 0 : index
      %c0_72 = arith.constant 0 : index
      %111 = arith.index_cast %71 : i32 to index
      %112 = vector.load %arg5[%c0_71, %c0_72, %111] : memref<1x3x2048xf32, #tpu.memory_space<vmem>>, vector<1x3x512xf32>
      %113 = vector.shape_cast %112 : vector<1x3x512xf32> to vector<3x512xf32>
      %114 = vector.shape_cast %110 : vector<3x512xf32> to vector<1x3x512xf32>
      tpu.vector_store %arg5[%c0_71, %c0_72, %111], %114 {strides = array<i32>} : memref<1x3x2048xf32, #tpu.memory_space<vmem>>, vector<1x3x512xf32>,
    }
    %c4_i32_52 = arith.constant 4 : i32
    return
  }
  func.func @transform_1(%arg0: i32, %arg1: i32) -> (i32, i32, i32) {
    %c0_i32 = arith.constant 0 : i32
    %c0_i32_0 = arith.constant 0 : i32
    %c0_i32_1 = arith.constant 0 : i32
    %c0_i32_2 = arith.constant 0 : i32
    return %c0_i32, %c0_i32_0, %c0_i32_1 : i32, i32, i32
  }
  func.func @transform_2(%arg0: i32, %arg1: i32) -> (i32, i32) {
    %c0_i32 = arith.constant 0 : i32
    %c0_i32_0 = arith.constant 0 : i32
    %c0_i32_1 = arith.constant 0 : i32
    return %c0_i32, %c0_i32_0 : i32, i32
  }
  func.func @transform_3(%arg0: i32, %arg1: i32) -> (i32, i32, i32) {
    %c0_i32 = arith.constant 0 : i32
    %c0_i32_0 = arith.constant 0 : i32
    return %arg0, %c0_i32, %arg1 : i32, i32, i32
  }
}

</mosaic_0001>

<bundles_post_ra>
// kernel: tpu_custom_call.1
= control target key start
LH: loop header
LB: loop body
LE: loop exit
PB: predicated region body
PF: predicated region fallthrough
CT: control target
= control target key end

     0   :  { %s2990_s12 = smov 0   ;;  %s2992_s13 = smov 0   ;;  %s3491_s0 = inlined_call_operand.hbm [shape: bf16[2,4,2944], index: 0, kind: input, shape index: {}]   ;;  %s3492_s1 = inlined_call_operand.vmem [shape: bf16[7,3,28], index: 1, kind: input, shape index: {}]   ;;  %s3493_s2 = inlined_call_operand.vmem [shape: f32[3,1], index: 2, kind: input, shape index: {}]   ;;  %s3494_s3 = inlined_call_operand.vmem [shape: f32[2,3,2048], index: 3, kind: output, shape index: {}]  }
   0x1   :  { %s2994_s14 = smov 0  }
   0x2 LB: > { %s25_s15 = sadd.s32 1, %s2951_s13  ;;  %p2637_p0 = scmp.ge.s32.totalorder %s2955_s14, 1  ;;  %s2955_s14 = sphi %s2994_s14, %s13_s14   ;;  %s2951_s13 = sphi %s2992_s13, %s3496_s13   ;;  %s2947_s12 = sphi %s2990_s12, %s3495_s12  }
   0x3   : > { %p27_p1 = scmp.ge.s32.totalorder %s25_s15, 2  ;;  %p117_p2 = scmp.lt.s32.totalorder %s2955_s14, 3 }
   0x5   : > { %s3498_s15 = smov (%p27_p1, %s25_s15), 0  ;;  %p118_p3 = pnand %p2637_p0, %p117_p2 }
   0x6   : > { %p139_p4 = scmp.lt.s32.totalorder (!%p118_p3), %s2947_s12, 1  ;;  %s2757_s16 = smul.u32 (!%p118_p3), 736, %s2947_s12 }
   0x7   : > { %121 = sbr.rel (%p118_p3) target bundleno = 579 (0x243), region = 28  ;;  %s2961_s20 = smov (!%p118_p3), [#allocation2]  }
   0x8   : > { %s155_s19 = scalar_lea.hbm (!%p118_p3), %s3491_s0, %s2757_s16  ;;  %s163_s21 = sshll.u32 (!%p118_p3), %s2961_s20, 4  ;;  %s164_s21 = int_to_ptr.vmem [resolvable:$true] %s163_s21 }
   0x9   : > { %s2905_s26 = scalar_lea.hbm (!%p118_p3), %s155_s19, 736  ;;  %s2907_s29 = scalar_lea.hbm (!%p118_p3), %s3491_s0, 1472 }
   0xa   : > { %p2906_p5 = scmp.ne.s32.totalorder (!%p118_p3), %s155_s19, %s2905_s26  ;;  %p2908_p6 = scmp.lt.s32.totalorder (!%p118_p3), %s155_s19, %s3491_s0 }
   0xb   : > { %p2909_p7 = scmp.lt.s32.totalorder (!%p118_p3), %s2907_s29, %s2905_s26 }
   0xc   : > { %s3500_s12 = smov (!%p139_p4, %s2947_s12), 1 }
   0xd   : > { %s2756_s22 = sshll.u32 %s3500_s12, 6  ;;  %p2910_p8 = por %p2909_p7, %p2908_p6 }
   0xe   : > { %s3014_s25 = scalar_lea.vmem %s3494_s3, %s2756_s22 }
   0xf   : > { %p2911_p9 = pnand %p2910_p8, %p2906_p5 }
  0x11   : > { %2914 = shalt.err (!%p2911_p9)  }
  0x12   : > { %s2915_s5 = scalar_lea.vmem %s164_s21, 736  ;;  %s2919_s6 = scalar_lea.vmem %s164_s21, 1472 }
  0x13   : > { %p2916_p10 = scmp.ne.s32.totalorder %s164_s21, %s2915_s5  ;;  %p2920_p11 = scmp.lt.s32.totalorder %s164_s21, %s164_s21 }
  0x14   : > { %p2921_p12 = scmp.lt.s32.totalorder %s2919_s6, %s2915_s5 }
  0x16   : > { %p2922_p13 = por %p2921_p12, %p2920_p11 }
  0x18   : > { %p2923_p0 = pnand %p2922_p13, %p2916_p10 }
  0x1a   : > { %2926 = shalt.err (!%p2923_p0)  }
  0x1b   : > { %166 = dma.hbm_to_vmem [thread:$0]  %s155_s19, 736, %s164_s21, [#allocation4] }
  0x1c   : > { %2943 = dma.done.wait [#allocation4], 736 }
  0x1d   : > { %2944 = vsyncadd [#allocation4], 4294966560  ;;  %v347_v0 = vlaneseq  ;;  %v2962_v1 = vmov 1983009808   ;;  %v215_v6 = vld [vmem:[#allocation2] sm:$0xff]  ;;  %v216_v7 = vld [vmem:[#allocation2 + $0x8] sm:$0xff] }
  0x1e   : > { %v345_v2 = vunpack.c.l.s4 %v2962_v1  ;;  %v217_v8 = vld [vmem:[#allocation2 + $0x10] sm:$0xff]  ;;  %v218_v9 = vld [vmem:[#allocation2 + $0x18] sm:$0xff]  ;;  %v219_v10 = vld [vmem:[#allocation2 + $0x20] sm:$0xff]  ;;  %v227_v12 = vcombine.high %v215_v6, %v215_v6  ;;  %v242_v13 = vcombine.high %v216_v7, %v216_v7  ;;  %s2963_s22 = smov 127   ;;  %v343_v25 = vcombine.low %v215_v6, %v215_v6  ;;  %s2964_s28 = smov 126  }
  0x1f   : > { %v348_v3 = vshrl.u32 %v347_v0, 7  ;;  %v2642_v11 = vld.sshfl [vmem:[#allocation2 + $0x28] sm:$0x33 pattern:$0x76325410]  ;;  %v257_v14 = vcombine.high %v217_v8, %v217_v8  ;;  %v272_v16 = vcombine.high %v218_v9, %v218_v9  ;;  %v287_v17 = vcombine.high %v219_v10, %v219_v10  ;;  %s2965_s29 = smov 125  }
  0x20   : > { %v346_v4 = vunpack.c.0.s8 %v345_v2  ;;  %2643 = vst.sshfl [vmem:[#allocation3] sm:$0xf pattern:$0x76325410] %v215_v6  ;;  %330 = vst [vmem:[#allocation3 + $0x50] sm:$0x33] %v2642_v11  ;;  %v373_v29 = vcombine.low %v217_v8, %v217_v8  ;;  %v358_v31 = vcombine.low %v216_v7, %v216_v7  ;;  %v388_v34 = vcombine.low %v218_v9, %v218_v9 }
  0x21   : > { %2645 = vst.sshfl [vmem:[#allocation3 + $0x10] sm:$0xf pattern:$0x76325410] %v216_v7  ;;  %v3030_v18 = vld [vmem:[%s3493_s2] sm:$0x7]  ;;  %v403_v41 = vcombine.low %v219_v10, %v219_v10 }
  0x22   : > { %v3022_v5 = vsub.s32 %v346_v4, %v348_v3  ;;  %2647 = vst.sshfl [vmem:[#allocation3 + $0x20] sm:$0xf pattern:$0x76325410] %v217_v8  ;;  %v3035_v19 = vld [vmem:[%s3492_s1] sm:$0x3] }
  0x23   : > { %2649 = vst.sshfl [vmem:[#allocation3 + $0x30] sm:$0xf pattern:$0x76325410] %v218_v9  ;;  %v3040_v20 = vld [vmem:[%s3492_s1 + $0x2] sm:$0x3] }
  0x24   : > { %v3025_v15 = vrot.slane %v216_v7, %v3022_v5  ;;  %2651 = vst.sshfl [vmem:[#allocation3 + $0x40] sm:$0xf pattern:$0x76325410] %v219_v10  ;;  %v3043_v21 = vrot.slane %v215_v6, %v3022_v5  ;;  %v3048_v22 = vld [vmem:[%s3492_s1 + $0x4] sm:$0x3]  ;;  %v3063_v26 = vrot.slane %v217_v8, %v3022_v5  ;;  %v3078_v30 = vrot.slane %v343_v25, %v3022_v5 }
  0x25   : > { %2644 = vst.sshfl [vmem:[#allocation3 + $0x8] sm:$0xf pattern:$0x76325410] %v227_v12  ;;  %v3053_v23 = vld [vmem:[%s3492_s1 + $0x6] sm:$0x3]  ;;  %v3083_v32 = vrot.slane %v218_v9, %v3022_v5  ;;  %v3088_v33 = vrot.slane %v373_v29, %v3022_v5  ;;  %v3091_v35 = vrot.slane %v227_v12, %v3022_v5  ;;  %v3094_v36 = vrot.slane %v242_v13, %v3022_v5 }
  0x26   : > { %2646 = vst.sshfl [vmem:[#allocation3 + $0x18] sm:$0xf pattern:$0x76325410] %v242_v13  ;;  %v3058_v24 = vld [vmem:[%s3492_s1 + $0x8] sm:$0x3]  ;;  %439 = vrot.lane.b32.xlu1 %v3025_v15, %s2963_s22  ;;  %435 = vrot.lane.b32.xlu0 %v3043_v21, %s2963_s22  ;;  %v3097_v37 = vrot.slane %v257_v14, %v3022_v5  ;;  %v3100_v38 = vrot.slane %v272_v16, %v3022_v5 }
  0x27   : > { %2648 = vst.sshfl [vmem:[#allocation3 + $0x28] sm:$0xf pattern:$0x76325410] %v257_v14  ;;  %v3068_v27 = vld [vmem:[%s3492_s1 + $0xa] sm:$0x3]  ;;  %v3103_v39 = vrot.slane %v287_v17, %v3022_v5  ;;  %v3108_v40 = vrot.slane %v358_v31, %v3022_v5  ;;  %v3113_v42 = vrot.slane %v388_v34, %v3022_v5  ;;  %v3118_v44 = vrot.slane %v219_v10, %v3022_v5 }
  0x28   : > { %2650 = vst.sshfl [vmem:[#allocation3 + $0x38] sm:$0xf pattern:$0x76325410] %v272_v16  ;;  %v3073_v28 = vld [vmem:[%s3492_s1 + $0xc] sm:$0x3]  ;;  %v3123_v45 = vrot.slane %v403_v41, %v3022_v5 }
  0x29   : > { %2652 = vst.sshfl [vmem:[#allocation3 + $0x48] sm:$0xf pattern:$0x76325410] %v287_v17  ;;  %v336_v43 = vld [vmem:[#allocation2 + $0x28] sm:$0x3f] }
  0x2a   : > { %443 = vrot.lane.b32.xlu1 %v3063_v26, %s2963_s22  ;;  %433 = vrot.lane.b32.xlu0 %v3078_v30, %s2963_s22  ;;  %v418_v46 = vcombine.low %v336_v43, %v336_v43  ;;  %v432_v47 = vrot.slane %v336_v43, %v3022_v5  ;;  %v520_v49 = vld [vmem:[#allocation2 + $0x28] sm:$0x3f]  ;;  %s2966_s30 = smov 124   ;;  %s2967_s4 = smov 123   ;;  %vm469_vm0 = vcmask 1043456   ;;  %vm471_vm1 = vcmask 1039360  }
  0x2b   : > { %v602_v50 = vcombine.high %v520_v49, %v520_v49  ;;  %v609_v52 = vrot.slane %v520_v49, %v3022_v5  ;;  %v703_v53 = vld [vmem:[#allocation2 + $0x28] sm:$0x3f]  ;;  %s2968_s5 = smov 122   ;;  %vm654_vm2 = vcmask 1031168   ;;  %vm837_vm3 = vcmask 1022976   ;;  %s3337_s6 = smov 0  }
  0x2c   : > { %v425_v48 = vrot.slane %v418_v46, %v3022_v5  ;;  %v785_v54 = vcombine.low %v703_v53, %v703_v53  ;;  %v799_v55 = vrot.slane %v703_v53, %v3022_v5  ;;  %v886_v57 = vld [vmem:[#allocation2 + $0x28] sm:$0x3f]  ;;  %vm1020_vm4 = vcmask 1014784  }
  0x2d   : > { %v616_v51 = vrot.slane %v602_v50, %v3022_v5  ;;  %v968_v58 = vcombine.high %v886_v57, %v886_v57  ;;  %v975_v60 = vrot.slane %v886_v57, %v3022_v5  ;;  %v1069_v61 = vld [vmem:[#allocation2 + $0x28] sm:$0x3f]  ;;  %vm1203_vm5 = vcmask 1006592  }
  0x2e   : > { %447 = vrot.lane.b32.xlu1 %v3083_v32, %s2963_s22  ;;  %441 = vrot.lane.b32.xlu0 %v3088_v33, %s2963_s22  ;;  %v792_v56 = vrot.slane %v785_v54, %v3022_v5  ;;  %v1151_v62 = vcombine.low %v1069_v61, %v1069_v61  ;;  %v1165_v63 = vrot.slane %v1069_v61, %v3022_v5  ;;  %vm1386_vm6 = vcmask 998400  }
  0x2f   : > { %v982_v59 = vrot.slane %v968_v58, %v3022_v5 }
  0x30   : > { %v1158_v0 = vrot.slane %v1151_v62, %v3022_v5 }
  0x32   : > { %437 = vrot.lane.b32.xlu1 %v3108_v40, %s2963_s22  ;;  %445 = vrot.lane.b32.xlu0 %v3113_v42, %s2963_s22 }
  0x36   : > { %451 = vrot.lane.b32.xlu1 %v3118_v44, %s2963_s22  ;;  %449 = vrot.lane.b32.xlu0 %v3123_v45, %s2963_s22 }
  0x3a   : > { %455 = vrot.lane.b32.xlu1 %v432_v47, %s2963_s22  ;;  %453 = vrot.lane.b32.xlu0 %v425_v48, %s2963_s22 }
  0x3e   : > { %619 = vrot.lane.b32.xlu1 %v3091_v35, %s2964_s28  ;;  %617 = vrot.lane.b32.xlu0 %v3043_v21, %s2964_s28 }
  0x42   : > { %623 = vrot.lane.b32.xlu1 %v3094_v36, %s2964_s28  ;;  %621 = vrot.lane.b32.xlu0 %v3025_v15, %s2964_s28 }
  0x46   : > { %627 = vrot.lane.b32.xlu1 %v3097_v37, %s2964_s28  ;;  %625 = vrot.lane.b32.xlu0 %v3063_v26, %s2964_s28 }
  0x4a   : > { %631 = vrot.lane.b32.xlu1 %v3100_v38, %s2964_s28  ;;  %629 = vrot.lane.b32.xlu0 %v3083_v32, %s2964_s28 }
  0x4e   : > { %635 = vrot.lane.b32.xlu1 %v3103_v39, %s2964_s28  ;;  %633 = vrot.lane.b32.xlu0 %v3118_v44, %s2964_s28 }
  0x52   : > { %639 = vrot.lane.b32.xlu1 %v616_v51, %s2964_s28  ;;  %637 = vrot.lane.b32.xlu0 %v609_v52, %s2964_s28 }
  0x56   : > { %802 = vrot.lane.b32.xlu1 %v3043_v21, %s2965_s29  ;;  %800 = vrot.lane.b32.xlu0 %v3078_v30, %s2965_s29 }
  0x5a   : > { %806 = vrot.lane.b32.xlu1 %v3025_v15, %s2965_s29  ;;  %804 = vrot.lane.b32.xlu0 %v3108_v40, %s2965_s29 }
  0x5e   : > { %810 = vrot.lane.b32.xlu1 %v3063_v26, %s2965_s29  ;;  %808 = vrot.lane.b32.xlu0 %v3088_v33, %s2965_s29 }
  0x62   : > { %814 = vrot.lane.b32.xlu1 %v3083_v32, %s2965_s29  ;;  %812 = vrot.lane.b32.xlu0 %v3113_v42, %s2965_s29 }
  0x66   : > { %818 = vrot.lane.b32.xlu1 %v3118_v44, %s2965_s29  ;;  %816 = vrot.lane.b32.xlu0 %v3123_v45, %s2965_s29 }
  0x6a   : > { %822 = vrot.lane.b32.xlu1 %v799_v55, %s2965_s29  ;;  %820 = vrot.lane.b32.xlu0 %v792_v56, %s2965_s29 }
  0x6e   : > { %985 = vrot.lane.b32.xlu1 %v3091_v35, %s2966_s30  ;;  %983 = vrot.lane.b32.xlu0 %v3043_v21, %s2966_s30 }
  0x72   : > { %989 = vrot.lane.b32.xlu1 %v3094_v36, %s2966_s30  ;;  %987 = vrot.lane.b32.xlu0 %v3025_v15, %s2966_s30 }
  0x76   : > { %993 = vrot.lane.b32.xlu1 %v3097_v37, %s2966_s30  ;;  %991 = vrot.lane.b32.xlu0 %v3063_v26, %s2966_s30 }
  0x7a   : > { %997 = vrot.lane.b32.xlu1 %v3100_v38, %s2966_s30  ;;  %995 = vrot.lane.b32.xlu0 %v3083_v32, %s2966_s30 }
  0x7e   : > { %1001 = vrot.lane.b32.xlu1 %v3103_v39, %s2966_s30  ;;  %999 = vrot.lane.b32.xlu0 %v3118_v44, %s2966_s30 }
  0x82   : > { %1005 = vrot.lane.b32.xlu1 %v982_v59, %s2966_s30  ;;  %1003 = vrot.lane.b32.xlu0 %v975_v60, %s2966_s30 }
  0x86   : > { %1168 = vrot.lane.b32.xlu1 %v3043_v21, %s2967_s4  ;;  %1166 = vrot.lane.b32.xlu0 %v3078_v30, %s2967_s4 }
  0x8a   : > { %1172 = vrot.lane.b32.xlu1 %v3025_v15, %s2967_s4  ;;  %1170 = vrot.lane.b32.xlu0 %v3108_v40, %s2967_s4 }
  0x8e   : > { %1176 = vrot.lane.b32.xlu1 %v3063_v26, %s2967_s4  ;;  %1174 = vrot.lane.b32.xlu0 %v3088_v33, %s2967_s4 }
  0x92   : > { %1180 = vrot.lane.b32.xlu1 %v3083_v32, %s2967_s4  ;;  %1178 = vrot.lane.b32.xlu0 %v3113_v42, %s2967_s4 }
  0x96   : > { %1184 = vrot.lane.b32.xlu1 %v3118_v44, %s2967_s4  ;;  %1182 = vrot.lane.b32.xlu0 %v3123_v45, %s2967_s4 }
  0x98   : > { %v440_v1 = vpop.permute.xlu1 %439  ;;  %v436_v2 = vpop.permute.xlu0 %435 }
  0x99   : > { %v458_v6 = vrot.slane %v436_v2, 4  ;;  %v460_v12 = vrot.slane %v440_v1, 4 }
  0x9a   : > { %1188 = vrot.lane.b32.xlu1 %v1165_v63, %s2967_s4  ;;  %1186 = vrot.lane.b32.xlu0 %v1158_v0, %s2967_s4 }
  0x9c   : > { %v444_v3 = vpop.permute.xlu1 %443  ;;  %v434_v4 = vpop.permute.xlu0 %433 }
  0x9d   : > { %v457_v7 = vrot.slane %v434_v4, 4  ;;  %v462_v13 = vrot.slane %v444_v3, 4 }
  0x9e   : > { %1351 = vrot.lane.b32.xlu1 %v3091_v35, %s2968_s5  ;;  %1349 = vrot.lane.b32.xlu0 %v3043_v21, %s2968_s5 }
  0x9f   : > { %v470_v8 = vsel %vm469_vm0, %v457_v7, %v458_v6 }
  0xa0   : > { %v448_v9 = vpop.permute.xlu1 %447  ;;  %v472_v10 = vsel %vm471_vm1, %v434_v4, %v470_v8  ;;  %v442_v11 = vpop.permute.xlu0 %441 }
  0xa1   : > { %504 = vst [vmem:[#allocation3] sm:$0xcc] %v472_v10  ;;  %v461_v14 = vrot.slane %v442_v11, 4  ;;  %v464_v33 = vrot.slane %v448_v9, 4 }
  0xa2   : > { %1355 = vrot.lane.b32.xlu1 %v3094_v36, %s2968_s5  ;;  %1353 = vrot.lane.b32.xlu0 %v3025_v15, %s2968_s5  ;;  %v1252_v36 = vld [vmem:[#allocation2 + $0x28] sm:$0x3f] }
  0xa3   : > { %v477_v16 = vsel %vm469_vm0, %v460_v12, %v461_v14  ;;  %v479_v17 = vsel %vm469_vm0, %v461_v14, %v462_v13  ;;  %v1334_v49 = vcombine.high %v1252_v36, %v1252_v36 }
  0xa4   : > { %v438_v21 = vpop.permute.xlu1 %437  ;;  %v478_v25 = vsel %vm471_vm1, %v440_v1, %v477_v16  ;;  %v480_v29 = vsel %vm471_vm1, %v442_v11, %v479_v17  ;;  %v446_v31 = vpop.permute.xlu0 %445 }
  0xa5   : > { %v459_v30 = vrot.slane %v438_v21, 4  ;;  %507 = vst [vmem:[#allocation3 + $0x18] sm:$0xcc] %v478_v25  ;;  %508 = vst [vmem:[#allocation3 + $0x20] sm:$0xcc] %v480_v29  ;;  %v463_v34 = vrot.slane %v446_v31, 4 }
  0xa6   : > { %1359 = vrot.lane.b32.xlu1 %v3097_v37, %s2968_s5  ;;  %1357 = vrot.lane.b32.xlu0 %v3063_v26, %s2968_s5 }
  0xa7   : > { %v473_v15 = vsel %vm469_vm0, %v458_v6, %v459_v30  ;;  %v475_v35 = vsel %vm469_vm0, %v459_v30, %v460_v12  ;;  %v481_v42 = vsel %vm469_vm0, %v462_v13, %v463_v34  ;;  %v483_v43 = vsel %vm469_vm0, %v463_v34, %v464_v33 }
  0xa8   : > { %v474_v40 = vsel %vm471_vm1, %v436_v2, %v473_v15  ;;  %v476_v41 = vsel %vm471_vm1, %v438_v21, %v475_v35  ;;  %v452_v45 = vpop.permute.xlu1 %451  ;;  %v482_v37 = vsel %vm471_vm1, %v444_v3, %v481_v42  ;;  %v484_v46 = vsel %vm471_vm1, %v446_v31, %v483_v43  ;;  %v450_v48 = vpop.permute.xlu0 %449 }
  0xa9   : > { %505 = vst [vmem:[#allocation3 + $0x8] sm:$0xcc] %v474_v40  ;;  %506 = vst [vmem:[#allocation3 + $0x10] sm:$0xcc] %v476_v41  ;;  %v466_v47 = vrot.slane %v452_v45, 4  ;;  %v465_v26 = vrot.slane %v450_v48, 4 }
  0xaa   : > { %509 = vst [vmem:[#allocation3 + $0x28] sm:$0xcc] %v482_v37  ;;  %510 = vst [vmem:[#allocation3 + $0x30] sm:$0xcc] %v484_v46  ;;  %1363 = vrot.lane.b32.xlu1 %v3100_v38, %s2968_s5  ;;  %1361 = vrot.lane.b32.xlu0 %v3083_v32, %s2968_s5  ;;  %v1348_v38 = vrot.slane %v1334_v49, %v3022_v5  ;;  %v1341_v32 = vrot.slane %v1252_v36, %v3022_v5 }
  0xab   : > { %v485_v50 = vsel %vm469_vm0, %v464_v33, %v465_v26  ;;  %v487_v51 = vsel %vm469_vm0, %v465_v26, %v466_v47 }
  0xac   : > { %v456_v52 = vpop.permute.xlu1 %455  ;;  %v486_v53 = vsel %vm471_vm1, %v448_v9, %v485_v50  ;;  %v488_v54 = vsel %vm471_vm1, %v450_v48, %v487_v51  ;;  %v454_v56 = vpop.permute.xlu0 %453 }
  0xad   : > { %v468_v55 = vrot.slane %v456_v52, 4  ;;  %511 = vst [vmem:[#allocation3 + $0x38] sm:$0xcc] %v486_v53  ;;  %512 = vst [vmem:[#allocation3 + $0x40] sm:$0xcc] %v488_v54  ;;  %v467_v57 = vrot.slane %v454_v56, 4 }
  0xae   : > { %1367 = vrot.lane.b32.xlu1 %v3103_v39, %s2968_s5  ;;  %1365 = vrot.lane.b32.xlu0 %v3118_v44, %s2968_s5 }
  0xaf   : > { %v489_v58 = vsel %vm469_vm0, %v466_v47, %v467_v57  ;;  %v491_v59 = vsel %vm469_vm0, %v467_v57, %v468_v55 }
  0xb0   : > { %v620_v60 = vpop.permute.xlu1 %619  ;;  %v490_v61 = vsel %vm471_vm1, %v452_v45, %v489_v58  ;;  %v492_v62 = vsel %vm471_vm1, %v454_v56, %v491_v59  ;;  %v618_v0 = vpop.permute.xlu0 %617 }
  0xb1   : > { %v642_v63 = vrot.slane %v620_v60, 4  ;;  %513 = vst [vmem:[#allocation3 + $0x48] sm:$0xcc] %v490_v61  ;;  %514 = vst [vmem:[#allocation3 + $0x50] sm:$0xcc] %v492_v62  ;;  %v641_v39 = vrot.slane %v618_v0, 4 }
  0xb2   : > { %1371 = vrot.lane.b32.xlu1 %v1348_v38, %s2968_s5  ;;  %1369 = vrot.lane.b32.xlu0 %v1341_v32, %s2968_s5 }
  0xb3   : > { %v653_v5 = vsel %vm469_vm0, %v641_v39, %v642_v63 }
  0xb4   : > { %v624_v44 = vpop.permute.xlu1 %623  ;;  %v655_v1 = vsel %vm654_vm2, %v618_v0, %v653_v5  ;;  %v622_v3 = vpop.permute.xlu0 %621 }
  0xb5   : > { %v644_v2 = vrot.slane %v624_v44, 4  ;;  %687 = vst [vmem:[#allocation3 + $0x58] sm:$0x33] %v655_v1  ;;  %v643_v4 = vrot.slane %v622_v3, 4 }
  0xb7   : > { %v656_v6 = vsel %vm469_vm0, %v642_v63, %v643_v4  ;;  %v658_v7 = vsel %vm469_vm0, %v643_v4, %v644_v2 }
  0xb8   : > { %v628_v8 = vpop.permute.xlu1 %627  ;;  %v657_v9 = vsel %vm654_vm2, %v620_v60, %v656_v6  ;;  %v659_v10 = vsel %vm654_vm2, %v622_v3, %v658_v7  ;;  %v626_v12 = vpop.permute.xlu0 %625 }
  0xb9   : > { %v646_v11 = vrot.slane %v628_v8, 4  ;;  %688 = vst [vmem:[#allocation3 + $0x60] sm:$0x33] %v657_v9  ;;  %689 = vst [vmem:[#allocation3 + $0x68] sm:$0x33] %v659_v10  ;;  %v645_v13 = vrot.slane %v626_v12, 4 }
  0xbb   : > { %v660_v14 = vsel %vm469_vm0, %v644_v2, %v645_v13  ;;  %v662_v16 = vsel %vm469_vm0, %v645_v13, %v646_v11 }
  0xbc   : > { %v632_v17 = vpop.permute.xlu1 %631  ;;  %v661_v21 = vsel %vm654_vm2, %v624_v44, %v660_v14  ;;  %v663_v25 = vsel %vm654_vm2, %v626_v12, %v662_v16  ;;  %v630_v30 = vpop.permute.xlu0 %629 }
  0xbd   : > { %v648_v29 = vrot.slane %v632_v17, 4  ;;  %690 = vst [vmem:[#allocation3 + $0x70] sm:$0x33] %v661_v21  ;;  %691 = vst [vmem:[#allocation3 + $0x78] sm:$0x33] %v663_v25  ;;  %v647_v31 = vrot.slane %v630_v30, 4 }
  0xbf   : > { %v664_v33 = vsel %vm469_vm0, %v646_v11, %v647_v31  ;;  %v666_v34 = vsel %vm469_vm0, %v647_v31, %v648_v29 }
  0xc0   : > { %v636_v15 = vpop.permute.xlu1 %635  ;;  %v665_v35 = vsel %vm654_vm2, %v628_v8, %v664_v33  ;;  %v667_v36 = vsel %vm654_vm2, %v630_v30, %v666_v34  ;;  %v634_v41 = vpop.permute.xlu0 %633 }
  0xc1   : > { %v650_v40 = vrot.slane %v636_v15, 4  ;;  %692 = vst [vmem:[#allocation3 + $0x80] sm:$0x33] %v665_v35  ;;  %693 = vst [vmem:[#allocation3 + $0x88] sm:$0x33] %v667_v36  ;;  %v649_v42 = vrot.slane %v634_v41, 4 }
  0xc3   : > { %v668_v43 = vsel %vm469_vm0, %v648_v29, %v649_v42  ;;  %v670_v45 = vsel %vm469_vm0, %v649_v42, %v650_v40 }
  0xc4   : > { %v640_v37 = vpop.permute.xlu1 %639  ;;  %v669_v46 = vsel %vm654_vm2, %v632_v17, %v668_v43  ;;  %v671_v47 = vsel %vm654_vm2, %v634_v41, %v670_v45  ;;  %v638_v26 = vpop.permute.xlu0 %637 }
  0xc5   : > { %v652_v48 = vrot.slane %v640_v37, 4  ;;  %694 = vst [vmem:[#allocation3 + $0x90] sm:$0x33] %v669_v46  ;;  %695 = vst [vmem:[#allocation3 + $0x98] sm:$0x33] %v671_v47  ;;  %v651_v49 = vrot.slane %v638_v26, 4 }
  0xc7   : > { %v672_v50 = vsel %vm469_vm0, %v650_v40, %v651_v49  ;;  %v674_v51 = vsel %vm469_vm0, %v651_v49, %v652_v48 }
  0xc8   : > { %v803_v52 = vpop.permute.xlu1 %802  ;;  %v673_v53 = vsel %vm654_vm2, %v636_v15, %v672_v50  ;;  %v675_v54 = vsel %vm654_vm2, %v638_v26, %v674_v51  ;;  %v801_v56 = vpop.permute.xlu0 %800 }
  0xc9   : > { %v825_v55 = vrot.slane %v803_v52, 4  ;;  %696 = vst [vmem:[#allocation3 + $0xa0] sm:$0x33] %v673_v53  ;;  %697 = vst [vmem:[#allocation3 + $0xa8] sm:$0x33] %v675_v54  ;;  %v824_v57 = vrot.slane %v801_v56, 4 }
  0xcb   : > { %v836_v38 = vsel %vm469_vm0, %v824_v57, %v825_v55 }
  0xcc   : > { %v807_v32 = vpop.permute.xlu1 %806  ;;  %v838_v58 = vsel %vm837_vm3, %v801_v56, %v836_v38  ;;  %v805_v60 = vpop.permute.xlu0 %804 }
  0xcd   : > { %v827_v59 = vrot.slane %v807_v32, 4  ;;  %870 = vst [vmem:[#allocation3 + $0x58] sm:$0xcc] %v838_v58  ;;  %v826_v61 = vrot.slane %v805_v60, 4 }
  0xcf   : > { %v839_v62 = vsel %vm469_vm0, %v825_v55, %v826_v61  ;;  %v841_v63 = vsel %vm469_vm0, %v826_v61, %v827_v59 }
  0xd0   : > { %v811_v0 = vpop.permute.xlu1 %810  ;;  %v840_v39 = vsel %vm837_vm3, %v803_v52, %v839_v62  ;;  %v842_v5 = vsel %vm837_vm3, %v805_v60, %v841_v63  ;;  %v809_v1 = vpop.permute.xlu0 %808 }
  0xd1   : > { %v829_v44 = vrot.slane %v811_v0, 4  ;;  %871 = vst [vmem:[#allocation3 + $0x60] sm:$0xcc] %v840_v39  ;;  %872 = vst [vmem:[#allocation3 + $0x68] sm:$0xcc] %v842_v5  ;;  %v828_v2 = vrot.slane %v809_v1, 4 }
  0xd3   : > { %v843_v3 = vsel %vm469_vm0, %v827_v59, %v828_v2  ;;  %v845_v4 = vsel %vm469_vm0, %v828_v2, %v829_v44 }
  0xd4   : > { %v815_v6 = vpop.permute.xlu1 %814  ;;  %v844_v7 = vsel %vm837_vm3, %v807_v32, %v843_v3  ;;  %v846_v8 = vsel %vm837_vm3, %v809_v1, %v845_v4  ;;  %v813_v10 = vpop.permute.xlu0 %812 }
  0xd5   : > { %v831_v9 = vrot.slane %v815_v6, 4  ;;  %873 = vst [vmem:[#allocation3 + $0x70] sm:$0xcc] %v844_v7  ;;  %874 = vst [vmem:[#allocation3 + $0x78] sm:$0xcc] %v846_v8  ;;  %v830_v11 = vrot.slane %v813_v10, 4 }
  0xd7   : > { %v847_v12 = vsel %vm469_vm0, %v829_v44, %v830_v11  ;;  %v849_v13 = vsel %vm469_vm0, %v830_v11, %v831_v9 }
  0xd8   : > { %v819_v14 = vpop.permute.xlu1 %818  ;;  %v848_v16 = vsel %vm837_vm3, %v811_v0, %v847_v12  ;;  %v850_v17 = vsel %vm837_vm3, %v813_v10, %v849_v13  ;;  %v817_v25 = vpop.permute.xlu0 %816 }
  0xd9   : > { %v833_v21 = vrot.slane %v819_v14, 4  ;;  %875 = vst [vmem:[#allocation3 + $0x80] sm:$0xcc] %v848_v16  ;;  %876 = vst [vmem:[#allocation3 + $0x88] sm:$0xcc] %v850_v17  ;;  %v832_v29 = vrot.slane %v817_v25, 4 }
  0xdb   : > { %v851_v30 = vsel %vm469_vm0, %v831_v9, %v832_v29  ;;  %v853_v31 = vsel %vm469_vm0, %v832_v29, %v833_v21 }
  0xdc   : > { %v823_v33 = vpop.permute.xlu1 %822  ;;  %v852_v34 = vsel %vm837_vm3, %v815_v6, %v851_v30  ;;  %v854_v15 = vsel %vm837_vm3, %v817_v25, %v853_v31  ;;  %v821_v36 = vpop.permute.xlu0 %820 }
  0xdd   : > { %v835_v35 = vrot.slane %v823_v33, 4  ;;  %877 = vst [vmem:[#allocation3 + $0x90] sm:$0xcc] %v852_v34  ;;  %878 = vst [vmem:[#allocation3 + $0x98] sm:$0xcc] %v854_v15  ;;  %v834_v40 = vrot.slane %v821_v36, 4 }
  0xdf   : > { %v855_v41 = vsel %vm469_vm0, %v833_v21, %v834_v40  ;;  %v857_v42 = vsel %vm469_vm0, %v834_v40, %v835_v35 }
  0xe0   : > { %v986_v43 = vpop.permute.xlu1 %985  ;;  %v856_v45 = vsel %vm837_vm3, %v819_v14, %v855_v41  ;;  %v858_v37 = vsel %vm837_vm3, %v821_v36, %v857_v42  ;;  %v984_v47 = vpop.permute.xlu0 %983 }
  0xe1   : > { %v1008_v46 = vrot.slane %v986_v43, 4  ;;  %879 = vst [vmem:[#allocation3 + $0xa0] sm:$0xcc] %v856_v45  ;;  %880 = vst [vmem:[#allocation3 + $0xa8] sm:$0xcc] %v858_v37  ;;  %v1007_v48 = vrot.slane %v984_v47, 4 }
  0xe3   : > { %v1019_v26 = vsel %vm469_vm0, %v1007_v48, %v1008_v46 }
  0xe4   : > { %v990_v49 = vpop.permute.xlu1 %989  ;;  %v1021_v50 = vsel %vm1020_vm4, %v984_v47, %v1019_v26  ;;  %v988_v52 = vpop.permute.xlu0 %987 }
  0xe5   : > { %v1010_v51 = vrot.slane %v990_v49, 4  ;;  %1053 = vst [vmem:[#allocation3 + $0xb0] sm:$0x33] %v1021_v50  ;;  %v1009_v53 = vrot.slane %v988_v52, 4 }
  0xe7   : > { %v1022_v54 = vsel %vm469_vm0, %v1008_v46, %v1009_v53  ;;  %v1024_v55 = vsel %vm469_vm0, %v1009_v53, %v1010_v51 }
  0xe8   : > { %v994_v56 = vpop.permute.xlu1 %993  ;;  %v1023_v57 = vsel %vm1020_vm4, %v986_v43, %v1022_v54  ;;  %v1025_v38 = vsel %vm1020_vm4, %v988_v52, %v1024_v55  ;;  %v992_v58 = vpop.permute.xlu0 %991 }
  0xe9   : > { %v1012_v32 = vrot.slane %v994_v56, 4  ;;  %1054 = vst [vmem:[#allocation3 + $0xb8] sm:$0x33] %v1023_v57  ;;  %1055 = vst [vmem:[#allocation3 + $0xc0] sm:$0x33] %v1025_v38  ;;  %v1011_v59 = vrot.slane %v992_v58, 4 }
  0xeb   : > { %v1026_v60 = vsel %vm469_vm0, %v1010_v51, %v1011_v59  ;;  %v1028_v61 = vsel %vm469_vm0, %v1011_v59, %v1012_v32 }
  0xec   : > { %v998_v62 = vpop.permute.xlu1 %997  ;;  %v1027_v63 = vsel %vm1020_vm4, %v990_v49, %v1026_v60  ;;  %v1029_v0 = vsel %vm1020_vm4, %v992_v58, %v1028_v61  ;;  %v996_v5 = vpop.permute.xlu0 %995 }
  0xed   : > { %v1014_v39 = vrot.slane %v998_v62, 4  ;;  %1056 = vst [vmem:[#allocation3 + $0xc8] sm:$0x33] %v1027_v63  ;;  %1057 = vst [vmem:[#allocation3 + $0xd0] sm:$0x33] %v1029_v0  ;;  %v1013_v44 = vrot.slane %v996_v5, 4 }
  0xef   : > { %v1030_v1 = vsel %vm469_vm0, %v1012_v32, %v1013_v44  ;;  %v1032_v2 = vsel %vm469_vm0, %v1013_v44, %v1014_v39 }
  0xf0   : > { %v1002_v3 = vpop.permute.xlu1 %1001  ;;  %v1031_v4 = vsel %vm1020_vm4, %v994_v56, %v1030_v1  ;;  %v1033_v6 = vsel %vm1020_vm4, %v996_v5, %v1032_v2  ;;  %v1000_v8 = vpop.permute.xlu0 %999 }
  0xf1   : > { %v1016_v7 = vrot.slane %v1002_v3, 4  ;;  %1058 = vst [vmem:[#allocation3 + $0xd8] sm:$0x33] %v1031_v4  ;;  %1059 = vst [vmem:[#allocation3 + $0xe0] sm:$0x33] %v1033_v6  ;;  %v1015_v9 = vrot.slane %v1000_v8, 4 }
  0xf3   : > { %v1034_v10 = vsel %vm469_vm0, %v1014_v39, %v1015_v9  ;;  %v1036_v11 = vsel %vm469_vm0, %v1015_v9, %v1016_v7 }
  0xf4   : > { %v1006_v12 = vpop.permute.xlu1 %1005  ;;  %v1035_v13 = vsel %vm1020_vm4, %v998_v62, %v1034_v10  ;;  %v1037_v14 = vsel %vm1020_vm4, %v1000_v8, %v1036_v11  ;;  %v1004_v17 = vpop.permute.xlu0 %1003 }
  0xf5   : > { %v1018_v16 = vrot.slane %v1006_v12, 4  ;;  %1060 = vst [vmem:[#allocation3 + $0xe8] sm:$0x33] %v1035_v13  ;;  %1061 = vst [vmem:[#allocation3 + $0xf0] sm:$0x33] %v1037_v14  ;;  %v1017_v21 = vrot.slane %v1004_v17, 4 }
  0xf7   : > { %v1038_v25 = vsel %vm469_vm0, %v1016_v7, %v1017_v21  ;;  %v1040_v29 = vsel %vm469_vm0, %v1017_v21, %v1018_v16 }
  0xf8   : > { %v1169_v30 = vpop.permute.xlu1 %1168  ;;  %v1039_v31 = vsel %vm1020_vm4, %v1002_v3, %v1038_v25  ;;  %v1041_v33 = vsel %vm1020_vm4, %v1004_v17, %v1040_v29  ;;  %v1167_v15 = vpop.permute.xlu0 %1166 }
  0xf9   : > { %v1191_v34 = vrot.slane %v1169_v30, 4  ;;  %1062 = vst [vmem:[#allocation3 + $0xf8] sm:$0x33] %v1039_v31  ;;  %1063 = vst [vmem:[#allocation3 + $0x100] sm:$0x33] %v1041_v33  ;;  %v1190_v35 = vrot.slane %v1167_v15, 4 }
  0xfb   : > { %v1202_v36 = vsel %vm469_vm0, %v1190_v35, %v1191_v34 }
  0xfc   : > { %v1173_v40 = vpop.permute.xlu1 %1172  ;;  %v1204_v41 = vsel %vm1203_vm5, %v1167_v15, %v1202_v36  ;;  %v1171_v43 = vpop.permute.xlu0 %1170 }
  0xfd   : > { %v1193_v42 = vrot.slane %v1173_v40, 4  ;;  %1236 = vst [vmem:[#allocation3 + $0xb0] sm:$0xcc] %v1204_v41  ;;  %v1192_v45 = vrot.slane %v1171_v43, 4 }
  0xff   : > { %v1205_v37 = vsel %vm469_vm0, %v1191_v34, %v1192_v45  ;;  %v1207_v46 = vsel %vm469_vm0, %v1192_v45, %v1193_v42 }
 0x100   : > { %v1177_v47 = vpop.permute.xlu1 %1176  ;;  %v1206_v48 = vsel %vm1203_vm5, %v1169_v30, %v1205_v37  ;;  %v1208_v26 = vsel %vm1203_vm5, %v1171_v43, %v1207_v46  ;;  %v1175_v50 = vpop.permute.xlu0 %1174 }
 0x101   : > { %v1195_v49 = vrot.slane %v1177_v47, 4  ;;  %1237 = vst [vmem:[#allocation3 + $0xb8] sm:$0xcc] %v1206_v48  ;;  %1238 = vst [vmem:[#allocation3 + $0xc0] sm:$0xcc] %v1208_v26  ;;  %v1194_v51 = vrot.slane %v1175_v50, 4 }
 0x103   : > { %v1209_v52 = vsel %vm469_vm0, %v1193_v42, %v1194_v51  ;;  %v1211_v53 = vsel %vm469_vm0, %v1194_v51, %v1195_v49 }
 0x104   : > { %v1181_v54 = vpop.permute.xlu1 %1180  ;;  %v1210_v55 = vsel %vm1203_vm5, %v1173_v40, %v1209_v52  ;;  %v1212_v56 = vsel %vm1203_vm5, %v1175_v50, %v1211_v53  ;;  %v1179_v38 = vpop.permute.xlu0 %1178 }
 0x105   : > { %v1197_v57 = vrot.slane %v1181_v54, 4  ;;  %1239 = vst [vmem:[#allocation3 + $0xc8] sm:$0xcc] %v1210_v55  ;;  %1240 = vst [vmem:[#allocation3 + $0xd0] sm:$0xcc] %v1212_v56  ;;  %v1196_v32 = vrot.slane %v1179_v38, 4 }
 0x107   : > { %v1213_v58 = vsel %vm469_vm0, %v1195_v49, %v1196_v32  ;;  %v1215_v59 = vsel %vm469_vm0, %v1196_v32, %v1197_v57 }
 0x108   : > { %v1185_v60 = vpop.permute.xlu1 %1184  ;;  %v1214_v61 = vsel %vm1203_vm5, %v1177_v47, %v1213_v58  ;;  %v1216_v62 = vsel %vm1203_vm5, %v1179_v38, %v1215_v59  ;;  %v1183_v0 = vpop.permute.xlu0 %1182 }
 0x109   : > { %v1199_v63 = vrot.slane %v1185_v60, 4  ;;  %1241 = vst [vmem:[#allocation3 + $0xd8] sm:$0xcc] %v1214_v61  ;;  %1242 = vst [vmem:[#allocation3 + $0xe0] sm:$0xcc] %v1216_v62  ;;  %v1198_v39 = vrot.slane %v1183_v0, 4 }
 0x10b   : > { %v1217_v5 = vsel %vm469_vm0, %v1197_v57, %v1198_v39  ;;  %v1219_v44 = vsel %vm469_vm0, %v1198_v39, %v1199_v63 }
 0x10c   : > { %v1189_v1 = vpop.permute.xlu1 %1188  ;;  %v1218_v2 = vsel %vm1203_vm5, %v1181_v54, %v1217_v5  ;;  %v1220_v3 = vsel %vm1203_vm5, %v1183_v0, %v1219_v44  ;;  %v1187_v6 = vpop.permute.xlu0 %1186 }
 0x10d   : > { %v1201_v4 = vrot.slane %v1189_v1, 4  ;;  %1243 = vst [vmem:[#allocation3 + $0xe8] sm:$0xcc] %v1218_v2  ;;  %1244 = vst [vmem:[#allocation3 + $0xf0] sm:$0xcc] %v1220_v3  ;;  %v1200_v7 = vrot.slane %v1187_v6, 4 }
 0x10f   : > { %v1221_v8 = vsel %vm469_vm0, %v1199_v63, %v1200_v7  ;;  %v1223_v9 = vsel %vm469_vm0, %v1200_v7, %v1201_v4 }
 0x110   : > { %v1352_v10 = vpop.permute.xlu1 %1351  ;;  %v1222_v11 = vsel %vm1203_vm5, %v1185_v60, %v1221_v8  ;;  %v1224_v12 = vsel %vm1203_vm5, %v1187_v6, %v1223_v9  ;;  %v1350_v14 = vpop.permute.xlu0 %1349 }
 0x111   : > { %v1374_v13 = vrot.slane %v1352_v10, 4  ;;  %1245 = vst [vmem:[#allocation3 + $0xf8] sm:$0xcc] %v1222_v11  ;;  %1246 = vst [vmem:[#allocation3 + $0x100] sm:$0xcc] %v1224_v12  ;;  %v1373_v16 = vrot.slane %v1350_v14, 4 }
 0x113   : > { %v1385_v17 = vsel %vm469_vm0, %v1373_v16, %v1374_v13 }
 0x114   : > { %v1356_v21 = vpop.permute.xlu1 %1355  ;;  %v1387_v25 = vsel %vm1386_vm6, %v1350_v14, %v1385_v17  ;;  %v1354_v30 = vpop.permute.xlu0 %1353 }
 0x115   : > { %v1376_v29 = vrot.slane %v1356_v21, 4  ;;  %1419 = vst [vmem:[#allocation3 + $0x108] sm:$0x33] %v1387_v25  ;;  %v1375_v31 = vrot.slane %v1354_v30, 4 }
 0x117   : > { %v1388_v33 = vsel %vm469_vm0, %v1374_v13, %v1375_v31  ;;  %v1390_v34 = vsel %vm469_vm0, %v1375_v31, %v1376_v29 }
 0x118   : > { %v1360_v15 = vpop.permute.xlu1 %1359  ;;  %v1389_v35 = vsel %vm1386_vm6, %v1352_v10, %v1388_v33  ;;  %v1391_v36 = vsel %vm1386_vm6, %v1354_v30, %v1390_v34  ;;  %v1358_v41 = vpop.permute.xlu0 %1357 }
 0x119   : > { %v1378_v40 = vrot.slane %v1360_v15, 4  ;;  %1420 = vst [vmem:[#allocation3 + $0x110] sm:$0x33] %v1389_v35  ;;  %1421 = vst [vmem:[#allocation3 + $0x118] sm:$0x33] %v1391_v36  ;;  %v1377_v42 = vrot.slane %v1358_v41, 4 }
 0x11b   : > { %v1392_v43 = vsel %vm469_vm0, %v1376_v29, %v1377_v42  ;;  %v1394_v45 = vsel %vm469_vm0, %v1377_v42, %v1378_v40 }
 0x11c   : > { %v1364_v37 = vpop.permute.xlu1 %1363  ;;  %v1393_v46 = vsel %vm1386_vm6, %v1356_v21, %v1392_v43  ;;  %v1395_v47 = vsel %vm1386_vm6, %v1358_v41, %v1394_v45  ;;  %v1362_v26 = vpop.permute.xlu0 %1361 }
 0x11d   : > { %v1380_v48 = vrot.slane %v1364_v37, 4  ;;  %1422 = vst [vmem:[#allocation3 + $0x120] sm:$0x33] %v1393_v46  ;;  %1423 = vst [vmem:[#allocation3 + $0x128] sm:$0x33] %v1395_v47  ;;  %v1379_v49 = vrot.slane %v1362_v26, 4 }
 0x11f   : > { %v1396_v50 = vsel %vm469_vm0, %v1378_v40, %v1379_v49  ;;  %v1398_v51 = vsel %vm469_vm0, %v1379_v49, %v1380_v48 }
 0x120   : > { %v1368_v52 = vpop.permute.xlu1 %1367  ;;  %v1397_v53 = vsel %vm1386_vm6, %v1360_v15, %v1396_v50  ;;  %v1399_v54 = vsel %vm1386_vm6, %v1362_v26, %v1398_v51  ;;  %v1366_v56 = vpop.permute.xlu0 %1365 }
 0x121   : > { %v1382_v55 = vrot.slane %v1368_v52, 4  ;;  %1424 = vst [vmem:[#allocation3 + $0x130] sm:$0x33] %v1397_v53  ;;  %1425 = vst [vmem:[#allocation3 + $0x138] sm:$0x33] %v1399_v54  ;;  %v1381_v57 = vrot.slane %v1366_v56, 4 }
 0x123   : > { %v1400_v38 = vsel %vm469_vm0, %v1380_v48, %v1381_v57  ;;  %v1402_v32 = vsel %vm469_vm0, %v1381_v57, %v1382_v55 }
 0x124   : > { %v1372_v58 = vpop.permute.xlu1 %1371  ;;  %v1401_v59 = vsel %vm1386_vm6, %v1364_v37, %v1400_v38  ;;  %v1403_v60 = vsel %vm1386_vm6, %v1366_v56, %v1402_v32  ;;  %v1370_v62 = vpop.permute.xlu0 %1369 }
 0x125   : > { %v1384_v61 = vrot.slane %v1372_v58, 4  ;;  %1426 = vst [vmem:[#allocation3 + $0x140] sm:$0x33] %v1401_v59  ;;  %1427 = vst [vmem:[#allocation3 + $0x148] sm:$0x33] %v1403_v60  ;;  %v1383_v63 = vrot.slane %v1370_v62, 4 }
 0x127   : > { %v1404_v0 = vsel %vm469_vm0, %v1382_v55, %v1383_v63  ;;  %v1406_v39 = vsel %vm469_vm0, %v1383_v63, %v1384_v61 }
 0x128   : > { %v1405_v5 = vsel %vm1386_vm6, %v1368_v52, %v1404_v0  ;;  %v1407_v44 = vsel %vm1386_vm6, %v1370_v62, %v1406_v39 }
 0x129   : > { %1428 = vst [vmem:[#allocation3 + $0x150] sm:$0x33] %v1405_v5  ;;  %1429 = vst [vmem:[#allocation3 + $0x158] sm:$0x33] %v1407_v44 }
 0x12a LB: >> { %v2969_v1 = vmov 0   ;;  %s3345_s7 = sshll.u32 %s2959_s6, 9  ;;  %vm1516_vm7 = vcmask 1045504   ;;  %vm1512_vm8 = vcmask 228352   ;;  %s1449_s6 = sadd.s32 1, %s2959_s6   ;;  %s2959_s6 = sphi %s3337_s6, %s1449_s6  }
 0x12b   : >> { %1561 = vmatprep.mubr.bf16.mxu0 %v2969_v1  ;;  %1602 = vmatprep.mubr.bf16.mxu1 %v2969_v1  ;;  %s1463_s8 = sadd.s32 128, %s3345_s7  ;;  %s1451_s9 = sshra.s32 %s3345_s7, 7 }
 0x12c   : >> { %2812 = vset.pattern.permute.xlu0 %v2969_v1  ;;  %s1464_s10 = sshra.s32 %s1463_s8, 7  ;;  %s3351_s11 = sshll.u32 %s1451_s9, 2 }
 0x12d   : >> { %2496 = vperm.xlu0 %2812, %v3030_v18   ;;  %s2661_s12 = sshll.u32 %s1464_s10, 2  ;;  %s3354_s16 = scalar_lea.vmem [#allocation3], %s3351_s11 }
 0x12e   : >> { %s1744_s17 = sadd.s32 256, %s3345_s7  ;;  %s1467_s18 = scalar_lea.vmem [#allocation3], %s2661_s12 }
 0x12f   : >> { %s1745_s19 = sshra.s32 %s1744_s17, 7  ;;  %s1894_s20 = sadd.s32 384, %s3345_s7 }
 0x130   : >> { %v2813_v2 = vld [vmem:[%s1467_s18 + $0xb4] ss:$88 sps:$4 sm:$0x3f]   ;;  %v2817_v4 = vld [vmem:[%s1467_s18 + $0xb0] ss:$88 sps:$4 sm:$0x3f]   ;;  %s2516_s17 = scalar_lea.vmem %s3014_s25, %s3351_s11 }
 0x131   : >> { %v2815_v3 = vld [vmem:[%s1467_s18 + $0xbc] ss:$88 sps:$4 sm:$0x3f]   ;;  %2670 = vmatprep.subr.msk.bf16.mxu0 %vm1516_vm7, %v2813_v2  ;;  %v2818_v6 = vld [vmem:[%s1467_s18 + $0xb8] ss:$88 sps:$4 sm:$0x3f]  }
 0x132   : >> { %2672 = vmatprep.subr.msk.bf16.mxu1 %vm1516_vm7, %v2815_v3  ;;  %v2819_v7 = vld [vmem:[%s1467_s18 + $0x4] ss:$88 sps:$4 sm:$0xff]   ;;  %v1518_v8 = vsel %vm1516_vm7, %v2817_v4, 0  ;;  %v1524_v9 = vsel %vm1516_vm7, %v2818_v6, 0  ;;  %v2823_v11 = vld [vmem:[%s1467_s18] ss:$88 sps:$4 sm:$0xff]  }
 0x133   : >> { %v2821_v10 = vld [vmem:[%s1467_s18 + $0xc] ss:$88 sps:$4 sm:$0xff]   ;;  %1542 = vmatpush1.bf16.msra.mxu0 %v1518_v8  ;;  %1583 = vmatpush1.bf16.msra.mxu1 %v1524_v9  ;;  %v2824_v12 = vld [vmem:[%s1467_s18 + $0x8] ss:$88 sps:$4 sm:$0xff]   ;;  %s2686_s21 = sshll.u32 %s1745_s19, 2  ;;  %s1895_s22 = sshra.s32 %s1894_s20, 7 }
 0x134   : >> { %1543 = vmatprep.subr.bf16.mxu0 %v2819_v7  ;;  %1584 = vmatprep.subr.bf16.mxu1 %v2821_v10  ;;  %v2825_v13 = vld [vmem:[%s3354_s16 + $0xb4] ss:$88 sps:$4 sm:$0x3f]   ;;  %v2829_v16 = vld [vmem:[%s3354_s16 + $0xb0] ss:$88 sps:$4 sm:$0x3f]  }
 0x135   : >> { %v2827_v14 = vld [vmem:[%s3354_s16 + $0xbc] ss:$88 sps:$4 sm:$0x3f]   ;;  %v2830_v17 = vld [vmem:[%s3354_s16 + $0xb8] ss:$88 sps:$4 sm:$0x3f]  }
 0x136   : >> { %v1651_v21 = vsel %vm1516_vm7, %v2829_v16, 0  ;;  %v1657_v25 = vsel %vm1516_vm7, %v2830_v17, 0  ;;  %v2833_v29 = vld [vmem:[%s3354_s16 + $0x4] ss:$88 sps:$4 sm:$0xff]   ;;  %v2831_v31 = vld [vmem:[%s3354_s16] ss:$88 sps:$4 sm:$0xff]  }
 0x137   : >> { %1544 = vmatpush1.bf16.msra.mxu0 %v2823_v11  ;;  %1585 = vmatpush1.bf16.msra.mxu1 %v2824_v12  ;;  %v2836_v30 = vld [vmem:[%s3354_s16 + $0xc] ss:$88 sps:$4 sm:$0xff]   ;;  %v2834_v33 = vld [vmem:[%s3354_s16 + $0x8] ss:$88 sps:$4 sm:$0xff]   ;;  %s1748_s23 = scalar_lea.vmem [#allocation3], %s2686_s21  ;;  %s2699_s24 = sshll.u32 %s1895_s22, 2 }
 0x138   : >> { %2682 = vmatprep.subr.msk.bf16.mxu0 %vm1516_vm7, %v2825_v13  ;;  %2684 = vmatprep.subr.msk.bf16.mxu1 %vm1516_vm7, %v2827_v14  ;;  %v2837_v34 = vld [vmem:[%s1748_s23 + $0xb4] ss:$88 sps:$4 sm:$0x3f]   ;;  %v2841_v35 = vld [vmem:[%s1748_s23 + $0xb0] ss:$88 sps:$4 sm:$0x3f]  }
 0x139   : >> { %v2839_v15 = vld [vmem:[%s1748_s23 + $0xbc] ss:$88 sps:$4 sm:$0x3f]   ;;  %v2842_v36 = vld [vmem:[%s1748_s23 + $0xb8] ss:$88 sps:$4 sm:$0x3f]  }
 0x13a   : >> { %2671 = vmatmul.mubr.msk.bf16.vlgmr.msra.gmra.mxu0 %vm1512_vm8, %v3040_v20  ;;  %2673 = vmatmul.mubr.msk.bf16.vlgmr.msra.gmra.mxu1 %vm1512_vm8, %v3040_v20  ;;  %s2044_s26 = sadd.s32 512, %s3345_s7  ;;  %v1797_v40 = vsel %vm1516_vm7, %v2841_v35, 0  ;;  %s3382_s27 = scalar_lea.vmem [#allocation3], %s2699_s24  ;;  %v2845_v41 = vld [vmem:[%s1748_s23 + $0x4] ss:$88 sps:$4 sm:$0xff]   ;;  %v1803_v42 = vsel %vm1516_vm7, %v2842_v36, 0 }
 0x13b   : >> { %1675 = vmatpush1.bf16.msra.mxu0 %v1651_v21  ;;  %1716 = vmatpush1.bf16.msra.mxu1 %v1657_v25  ;;  %s2045_s28 = sshra.s32 %s2044_s26, 7  ;;  %v2848_v43 = vld [vmem:[%s1748_s23 + $0xc] ss:$88 sps:$4 sm:$0xff]   ;;  %v2843_v45 = vld [vmem:[%s1748_s23] ss:$88 sps:$4 sm:$0xff]   ;;  %s2194_s4 = sadd.s32 640, %s3345_s7 }
 0x13c   : >> { %1676 = vmatprep.subr.bf16.mxu0 %v2833_v29  ;;  %1717 = vmatprep.subr.bf16.mxu1 %v2836_v30  ;;  %v2846_v37 = vld [vmem:[%s1748_s23 + $0x8] ss:$88 sps:$4 sm:$0xff]   ;;  %v2849_v46 = vld [vmem:[%s3382_s27 + $0xb4] ss:$88 sps:$4 sm:$0x3f]   ;;  %s2712_s29 = sshll.u32 %s2045_s28, 2 }
 0x13d   : >> { %1694 = vmatprep.mubr.bf16.mxu0 %v2969_v1  ;;  %1735 = vmatprep.mubr.bf16.mxu1 %v2969_v1  ;;  %v2853_v47 = vld [vmem:[%s3382_s27 + $0xb0] ss:$88 sps:$4 sm:$0x3f]   ;;  %v2851_v26 = vld [vmem:[%s3382_s27 + $0xbc] ss:$88 sps:$4 sm:$0x3f]  }
 0x13e   : >> { %v2854_v48 = vld [vmem:[%s3382_s27 + $0xb8] ss:$88 sps:$4 sm:$0x3f]   ;;  %s3397_s30 = scalar_lea.vmem [#allocation3], %s2712_s29  ;;  %v1947_v49 = vsel %vm1516_vm7, %v2853_v47, 0  ;;  %s2195_s5 = sshra.s32 %s2194_s4, 7 }
 0x13f   : >> { %1677 = vmatpush1.bf16.msra.mxu0 %v2831_v31  ;;  %1718 = vmatpush1.bf16.msra.mxu1 %v2834_v33  ;;  %v1953_v50 = vsel %vm1516_vm7, %v2854_v48, 0  ;;  %v2857_v51 = vld [vmem:[%s3382_s27 + $0x4] ss:$88 sps:$4 sm:$0xff]   ;;  %s2344_s8 = sadd.s32 768, %s3345_s7  ;;  %v2855_v53 = vld [vmem:[%s3382_s27] ss:$88 sps:$4 sm:$0xff]  }
 0x140   : >> { %2695 = vmatprep.subr.msk.bf16.mxu0 %vm1516_vm7, %v2837_v34  ;;  %2697 = vmatprep.subr.msk.bf16.mxu1 %vm1516_vm7, %v2839_v15  ;;  %v2860_v52 = vld [vmem:[%s3382_s27 + $0xc] ss:$88 sps:$4 sm:$0xff]   ;;  %v2863_v55 = vld [vmem:[%s3397_s30 + $0xbc] ss:$88 sps:$4 sm:$0x3f]   ;;  %s2725_s9 = sshll.u32 %s2195_s5, 2 }
 0x141   : >> { %v2861_v54 = vld [vmem:[%s3397_s30 + $0xb4] ss:$88 sps:$4 sm:$0x3f]   ;;  %s2345_s10 = sshra.s32 %s2344_s8, 7  ;;  %v2858_v56 = vld [vmem:[%s3382_s27 + $0x8] ss:$88 sps:$4 sm:$0xff]  }
 0x142   : >> { %2683 = vmatmul.mubr.msk.bf16.vlgmr.msra.gmra.mxu0 %vm1512_vm8, %v3035_v19  ;;  %2685 = vmatmul.mubr.msk.bf16.vlgmr.msra.gmra.mxu1 %vm1512_vm8, %v3035_v19  ;;  %v2865_v57 = vld [vmem:[%s3397_s30 + $0xb0] ss:$88 sps:$4 sm:$0x3f]   ;;  %s3417_s7 = scalar_lea.vmem [#allocation3], %s2725_s9  ;;  %s2738_s12 = sshll.u32 %s2345_s10, 2 }
 0x143   : >> { %1821 = vmatpush1.bf16.msra.mxu0 %v1797_v40  ;;  %1862 = vmatpush1.bf16.msra.mxu1 %v1803_v42  ;;  %v2866_v38 = vld [vmem:[%s3397_s30 + $0xb8] ss:$88 sps:$4 sm:$0x3f]   ;;  %v2097_v32 = vsel %vm1516_vm7, %v2865_v57, 0  ;;  %v2869_v58 = vld [vmem:[%s3397_s30 + $0x4] ss:$88 sps:$4 sm:$0xff]  }
 0x144   : >> { %1822 = vmatprep.subr.bf16.mxu0 %v2845_v41  ;;  %1863 = vmatprep.subr.bf16.mxu1 %v2848_v43  ;;  %v2103_v59 = vsel %vm1516_vm7, %v2866_v38, 0  ;;  %v2872_v60 = vld [vmem:[%s3397_s30 + $0xc] ss:$88 sps:$4 sm:$0xff]   ;;  %v2867_v61 = vld [vmem:[%s3397_s30] ss:$88 sps:$4 sm:$0xff]   ;;  %s3429_s16 = scalar_lea.vmem [#allocation3], %s2738_s12 }
 0x145   : >> { %1840 = vmatprep.mubr.bf16.mxu0 %v2969_v1  ;;  %1881 = vmatprep.mubr.bf16.mxu1 %v2969_v1  ;;  %v2870_v62 = vld [vmem:[%s3397_s30 + $0x8] ss:$88 sps:$4 sm:$0xff]   ;;  %v2873_v63 = vld [vmem:[%s3417_s7 + $0xb4] ss:$88 sps:$4 sm:$0x3f]   ;;  %p1446_p1 = scmp.ge.s32.totalorder %s1449_s6, 4  }
 0x146   : >> { %v2875_v0 = vld [vmem:[%s3417_s7 + $0xbc] ss:$88 sps:$4 sm:$0x3f]   ;;  %v2877_v39 = vld [vmem:[%s3417_s7 + $0xb0] ss:$88 sps:$4 sm:$0x3f]  }
 0x147   : >> { %1823 = vmatpush1.bf16.msra.mxu0 %v2843_v45  ;;  %1864 = vmatpush1.bf16.msra.mxu1 %v2846_v37  ;;  %v2878_v5 = vld [vmem:[%s3417_s7 + $0xb8] ss:$88 sps:$4 sm:$0x3f]   ;;  %v2247_v44 = vsel %vm1516_vm7, %v2877_v39, 0  ;;  %v2881_v3 = vld [vmem:[%s3417_s7 + $0x4] ss:$88 sps:$4 sm:$0xff]  }
 0x148   : >> { %2708 = vmatprep.subr.msk.bf16.mxu0 %vm1516_vm7, %v2849_v46  ;;  %2710 = vmatprep.subr.msk.bf16.mxu1 %vm1516_vm7, %v2851_v26  ;;  %v2253_v2 = vsel %vm1516_vm7, %v2878_v5, 0  ;;  %v2884_v4 = vld [vmem:[%s3417_s7 + $0xc] ss:$88 sps:$4 sm:$0xff]   ;;  %v2879_v6 = vld [vmem:[%s3417_s7] ss:$88 sps:$4 sm:$0xff]  }
 0x149   : >> { %v2882_v7 = vld [vmem:[%s3417_s7 + $0x8] ss:$88 sps:$4 sm:$0xff]   ;;  %v2885_v8 = vld [vmem:[%s3429_s16 + $0xb4] ss:$88 sps:$4 sm:$0x3f]  }
 0x14a   : >> { %2696 = vmatmul.mubr.msk.bf16.vlgmr.msra.gmra.mxu0 %vm1512_vm8, %v3048_v22  ;;  %2698 = vmatmul.mubr.msk.bf16.vlgmr.msra.gmra.mxu1 %vm1512_vm8, %v3048_v22  ;;  %v2887_v9 = vld [vmem:[%s3429_s16 + $0xbc] ss:$88 sps:$4 sm:$0x3f]   ;;  %v2889_v10 = vld [vmem:[%s3429_s16 + $0xb0] ss:$88 sps:$4 sm:$0x3f]  }
 0x14b   : >> { %1971 = vmatpush1.bf16.msra.mxu0 %v1947_v49  ;;  %2012 = vmatpush1.bf16.msra.mxu1 %v1953_v50  ;;  %v2890_v11 = vld [vmem:[%s3429_s16 + $0xb8] ss:$88 sps:$4 sm:$0x3f]   ;;  %v2397_v12 = vsel %vm1516_vm7, %v2889_v10, 0  ;;  %v2893_v14 = vld [vmem:[%s3429_s16 + $0x4] ss:$88 sps:$4 sm:$0xff]  }
 0x14c   : >> { %1972 = vmatprep.subr.bf16.mxu0 %v2857_v51  ;;  %2013 = vmatprep.subr.bf16.mxu1 %v2860_v52  ;;  %v2403_v13 = vsel %vm1516_vm7, %v2890_v11, 0  ;;  %v2896_v16 = vld [vmem:[%s3429_s16 + $0xc] ss:$88 sps:$4 sm:$0xff]   ;;  %v2891_v17 = vld [vmem:[%s3429_s16] ss:$88 sps:$4 sm:$0xff]  }
 0x14d   : >> { %1990 = vmatprep.mubr.bf16.mxu0 %v2969_v1  ;;  %2031 = vmatprep.mubr.bf16.mxu1 %v2969_v1  ;;  %v2894_v21 = vld [vmem:[%s3429_s16 + $0x8] ss:$88 sps:$4 sm:$0xff]  }
 0x14f   : >> { %1973 = vmatpush1.bf16.msra.mxu0 %v2855_v53  ;;  %2014 = vmatpush1.bf16.msra.mxu1 %v2858_v56 }
 0x150   : >> { %2721 = vmatprep.subr.msk.bf16.mxu0 %vm1516_vm7, %v2861_v54  ;;  %2723 = vmatprep.subr.msk.bf16.mxu1 %vm1516_vm7, %v2863_v55 }
 0x152   : >> { %2709 = vmatmul.mubr.msk.bf16.vlgmr.msra.gmra.mxu0 %vm1512_vm8, %v3053_v23  ;;  %2711 = vmatmul.mubr.msk.bf16.vlgmr.msra.gmra.mxu1 %vm1512_vm8, %v3053_v23 }
 0x153   : >> { %2121 = vmatpush1.bf16.msra.mxu0 %v2097_v32  ;;  %2162 = vmatpush1.bf16.msra.mxu1 %v2103_v59 }
 0x154   : >> { %2122 = vmatprep.subr.bf16.mxu0 %v2869_v58  ;;  %2163 = vmatprep.subr.bf16.mxu1 %v2872_v60 }
 0x155   : >> { %2140 = vmatprep.mubr.bf16.mxu0 %v2969_v1  ;;  %2181 = vmatprep.mubr.bf16.mxu1 %v2969_v1 }
 0x157   : >> { %2123 = vmatpush1.bf16.msra.mxu0 %v2867_v61  ;;  %2164 = vmatpush1.bf16.msra.mxu1 %v2870_v62 }
 0x158   : >> { %2734 = vmatprep.subr.msk.bf16.mxu0 %vm1516_vm7, %v2873_v63  ;;  %2736 = vmatprep.subr.msk.bf16.mxu1 %vm1516_vm7, %v2875_v0 }
 0x15a   : >> { %2722 = vmatmul.mubr.msk.bf16.vlgmr.msra.gmra.mxu0 %vm1512_vm8, %v3058_v24  ;;  %2724 = vmatmul.mubr.msk.bf16.vlgmr.msra.gmra.mxu1 %vm1512_vm8, %v3058_v24 }
 0x15b   : >> { %2271 = vmatpush1.bf16.msra.mxu0 %v2247_v44  ;;  %2312 = vmatpush1.bf16.msra.mxu1 %v2253_v2 }
 0x15c   : >> { %2272 = vmatprep.subr.bf16.mxu0 %v2881_v3  ;;  %2313 = vmatprep.subr.bf16.mxu1 %v2884_v4 }
 0x15d   : >> { %2290 = vmatprep.mubr.bf16.mxu0 %v2969_v1  ;;  %2331 = vmatprep.mubr.bf16.mxu1 %v2969_v1 }
 0x15f   : >> { %2273 = vmatpush1.bf16.msra.mxu0 %v2879_v6  ;;  %2314 = vmatpush1.bf16.msra.mxu1 %v2882_v7 }
 0x160   : >> { %2747 = vmatprep.subr.msk.bf16.mxu0 %vm1516_vm7, %v2885_v8  ;;  %2749 = vmatprep.subr.msk.bf16.mxu1 %vm1516_vm7, %v2887_v9 }
 0x162   : >> { %2735 = vmatmul.mubr.msk.bf16.vlgmr.msra.gmra.mxu0 %vm1512_vm8, %v3068_v27  ;;  %2737 = vmatmul.mubr.msk.bf16.vlgmr.msra.gmra.mxu1 %vm1512_vm8, %v3068_v27 }
 0x163   : >> { %2421 = vmatpush1.bf16.msra.mxu0 %v2397_v12  ;;  %2462 = vmatpush1.bf16.msra.mxu1 %v2403_v13 }
 0x164   : >> { %2422 = vmatprep.subr.bf16.mxu0 %v2893_v14  ;;  %2463 = vmatprep.subr.bf16.mxu1 %v2896_v16 }
 0x165   : >> { %2440 = vmatprep.mubr.bf16.mxu0 %v2969_v1  ;;  %2481 = vmatprep.mubr.bf16.mxu1 %v2969_v1 }
 0x167   : >> { %2423 = vmatpush1.bf16.msra.mxu0 %v2891_v17  ;;  %2464 = vmatpush1.bf16.msra.mxu1 %v2894_v21 }
 0x16a   : >> { %2748 = vmatmul.mubr.msk.bf16.vlgmr.msra.gmra.mxu0 %vm1512_vm8, %v3073_v28  ;;  %2750 = vmatmul.mubr.msk.bf16.vlgmr.msra.gmra.mxu1 %vm1512_vm8, %v3073_v28 }
 0x1fa   : >> { %v1563_v25 = vpop.f32.mrf.mxu0  ;;  %v1604_v29 = vpop.f32.mrf.mxu1 }
 0x1fc   : >> { %v1565_v30 = vpop.f32.mrf.mxu0  ;;  %v1606_v31 = vpop.f32.mrf.mxu1 }
 0x1fe   : >> { %v1567_v33 = vpop.f32.mrf.mxu0  ;;  %v1608_v34 = vpop.f32.mrf.mxu1 }
 0x200   : >> { %v1568_v15 = vpop.f32.mrf.mxu0  ;;  %v1609_v35 = vpop.f32.mrf.mxu1 }
 0x202   : >> { %v1696_v36 = vpop.f32.mrf.mxu0  ;;  %v1737_v40 = vpop.f32.mrf.mxu1 }
 0x203   : >> { %v1697_v44 = vadd.f32 %v1696_v36, %v1563_v25  ;;  %v1738_v2 = vadd.f32 %v1737_v40, %v1604_v29 }
 0x204   : >> { %v1698_v41 = vpop.f32.mrf.mxu0  ;;  %v1739_v1 = vpop.f32.mrf.mxu1 }
 0x205   : >> { %v1699_v6 = vadd.f32 %v1698_v41, %v1565_v30  ;;  %v1740_v7 = vadd.f32 %v1739_v1, %v1606_v31  ;;  %v2497_v41 = vpop.permute.xlu0 %2496 }
 0x206   : >> { %v1700_v42 = vpop.f32.mrf.mxu0  ;;  %v1741_v43 = vpop.f32.mrf.mxu1 }
 0x208   : >> { %v1701_v45 = vpop.f32.mrf.mxu0  ;;  %v1742_v37 = vpop.f32.mrf.mxu1 }
 0x20a   : >> { %v1842_v46 = vpop.f32.mrf.mxu0  ;;  %v1883_v47 = vpop.f32.mrf.mxu1 }
 0x20b   : >> { %v1890_v8 = vadd.f32 %v1842_v46, %v1697_v44  ;;  %v1892_v9 = vadd.f32 %v1883_v47, %v1738_v2 }
 0x20c   : >> { %v1844_v48 = vpop.f32.mrf.mxu0  ;;  %v1885_v26 = vpop.f32.mrf.mxu1 }
 0x20d   : >> { %v1891_v12 = vadd.f32 %v1844_v48, %v1699_v6  ;;  %v1893_v13 = vadd.f32 %v1885_v26, %v1740_v7 }
 0x20e   : >> { %v1846_v49 = vpop.f32.mrf.mxu0  ;;  %v1887_v50 = vpop.f32.mrf.mxu1 }
 0x210   : >> { %v1847_v51 = vpop.f32.mrf.mxu0  ;;  %v1888_v52 = vpop.f32.mrf.mxu1 }
 0x212   : >> { %v1992_v53 = vpop.f32.mrf.mxu0  ;;  %v2033_v54 = vpop.f32.mrf.mxu1 }
 0x213   : >> { %v2040_v14 = vadd.f32 %v1992_v53, %v1890_v8  ;;  %v2042_v16 = vadd.f32 %v2033_v54, %v1892_v9 }
 0x214   : >> { %v1994_v55 = vpop.f32.mrf.mxu0  ;;  %v2035_v56 = vpop.f32.mrf.mxu1 }
 0x215   : >> { %v2041_v33 = vadd.f32 %v1994_v55, %v1891_v12  ;;  %v2043_v34 = vadd.f32 %v2035_v56, %v1893_v13 }
 0x216   : >> { %v1996_v57 = vpop.f32.mrf.mxu0  ;;  %v2037_v38 = vpop.f32.mrf.mxu1 }
 0x218   : >> { %v1997_v32 = vpop.f32.mrf.mxu0  ;;  %v2038_v58 = vpop.f32.mrf.mxu1 }
 0x21a   : >> { %v2142_v59 = vpop.f32.mrf.mxu0  ;;  %v2183_v60 = vpop.f32.mrf.mxu1 }
 0x21b   : >> { %v2190_v15 = vadd.f32 %v2142_v59, %v2040_v14  ;;  %v2192_v35 = vadd.f32 %v2183_v60, %v2042_v16 }
 0x21c   : >> { %v2144_v61 = vpop.f32.mrf.mxu0  ;;  %v2185_v62 = vpop.f32.mrf.mxu1 }
 0x21d   : >> { %v2191_v36 = vadd.f32 %v2144_v61, %v2041_v33  ;;  %v2193_v40 = vadd.f32 %v2185_v62, %v2043_v34 }
 0x21e   : >> { %v2146_v63 = vpop.f32.mrf.mxu0  ;;  %v2187_v0 = vpop.f32.mrf.mxu1 }
 0x220   : >> { %v2147_v39 = vpop.f32.mrf.mxu0  ;;  %v2188_v5 = vpop.f32.mrf.mxu1 }
 0x222   : >> { %v2292_v3 = vpop.f32.mrf.mxu0  ;;  %v2333_v4 = vpop.f32.mrf.mxu1 }
 0x223   : >> { %v2340_v30 = vadd.f32 %v2292_v3, %v2190_v15  ;;  %v2342_v31 = vadd.f32 %v2333_v4, %v2192_v35 }
 0x224   : >> { %v2294_v10 = vpop.f32.mrf.mxu0  ;;  %v2335_v11 = vpop.f32.mrf.mxu1 }
 0x225   : >> { %v2341_v43 = vadd.f32 %v2294_v10, %v2191_v36  ;;  %v2343_v45 = vadd.f32 %v2335_v11, %v2193_v40 }
 0x226   : >> { %v2296_v17 = vpop.f32.mrf.mxu0  ;;  %v2337_v21 = vpop.f32.mrf.mxu1 }
 0x228   : >> { %v2297_v25 = vpop.f32.mrf.mxu0  ;;  %v2338_v29 = vpop.f32.mrf.mxu1 }
 0x22a   : >> { %v2442_v1 = vpop.f32.mrf.mxu0  ;;  %v2483_v42 = vpop.f32.mrf.mxu1 }
 0x22b   : >> { %v2490_v37 = vadd.f32 %v2442_v1, %v2340_v30  ;;  %v2492_v46 = vadd.f32 %v2483_v42, %v2342_v31 }
 0x22c   : >> { %v2444_v47 = vpop.f32.mrf.mxu0  ;;  %v2485_v48 = vpop.f32.mrf.mxu1 }
 0x22d   : >> { %v2499_v26 = vadd.f32 %v2497_v41, %v2490_v37  ;;  %v2501_v49 = vadd.f32 %v2497_v41, %v2492_v46  ;;  %v2491_v50 = vadd.f32 %v2444_v47, %v2341_v43  ;;  %v2493_v51 = vadd.f32 %v2485_v48, %v2343_v45 }
 0x22e   : >> { %v2446_v52 = vpop.f32.mrf.mxu0  ;;  %v2487_v53 = vpop.f32.mrf.mxu1 }
 0x22f   : >> { %2897 = vtanh.f32 %v2499_v26  ;;  %v2500_v54 = vadd.f32 %v2497_v41, %v2491_v50  ;;  %v2502_v55 = vadd.f32 %v2497_v41, %v2493_v51 }
 0x230   : >> { %2899 = vtanh.f32 %v2501_v49  ;;  %v2447_v56 = vpop.f32.mrf.mxu0  ;;  %v2488_v57 = vpop.f32.mrf.mxu1 }
 0x231   : >> { %2901 = vtanh.f32 %v2500_v54 }
 0x232   : >> { %2903 = vtanh.f32 %v2502_v55 }
 0x23c   : >> { %v2898_v38 = vpop.eup %2897 }
 0x23d   : >> { %v2900_v32 = vpop.eup %2899 }
 0x23e   : >> { %v2902_v58 = vpop.eup %2901  ;;  %1448 = sbr.rel (!%p1446_p1) target bundleno = 298 (0x12a), region = 99 }
 0x23f   : >> { %v2904_v59 = vpop.eup %2903  ;;  %v2511_v60 = vcombine.low %v2898_v38, %v2902_v58 }
 0x240   : >> { %v2512_v61 = vcombine.low %v2900_v32, %v2904_v59 }
 0x241   : >> { %2517 = vst [vmem:[%s2516_s17] sm:$0x77] %v2511_v60 }
 0x242   : >> { %2518 = vst [vmem:[%s2516_s17 + $0x8] sm:$0x77] %v2512_v61 }
 0x243 PF: > { %s13_s14 = sadd.s32 1, %s2955_s14   ;;  %s3495_s12 = smov %s2951_s13 }
 0x244   : > { %p10_p2 = scmp.ge.s32.totalorder %s13_s14, 4   ;;  %s3496_s13 = smov %s3498_s15 }
 0x246   :  { %12 = sbr.rel (!%p10_p2) target bundleno = 2 (0x2), region = 110 }
 0x24b   :  { %2549 = vsyncmov [#allocation4] }
 0x24e   :  { %s2550_s11 = vpop.sfrf %2549 }
 0x24f   :  { %p2754_p3 = scmp.ne.s32.totalorder %s2550_s11, 0 }
 0x251   :  { %2554 = shalt.err (%p2754_p3)  }
 0x252   :  { %2556 = vsyncmov [#allocation4 + $0x1] }
 0x255   :  { %s2557_s6 = vpop.sfrf %2556 }
 0x256   :  { %p2755_p4 = scmp.ne.s32.totalorder %s2557_s6, 0 }
 0x258   :  { %2561 = shalt.err (%p2755_p4)  }

</bundles_post_ra>
